<compile_context>
chip_gen: v5e
topology: v5e:2x2
jax: 0.10.0
libtpu: 0.0.40
codegen_flags: <defaults>
</compile_context>

<pallas_src>
import jax
import jax.numpy as jnp
from jax import lax
from jax.experimental import pallas as pl
from jax.experimental.pallas import tpu as pltpu

FILTER = 8
SPATIAL = (2, 2)
DEC_IN_FEATURES = 24  # input features of the first (kept) decoder Linear
LANE = 128


def _rup(v, m):
    return -(-v // m) * m


# ------------------------------------------------------------------
# One fused Pallas kernel for the whole decoder
# ------------------------------------------------------------------
def _decoder_kernel(x_ref, mk0_ref, mk1_ref,
                    wl_ref, bl_ref,
                    g0_ref, m1_ref, b1_ref,
                    g1_ref, m2_ref, b2_ref,
                    o_ref):
    """Rows = batch tile (sublane); flattened channel*spatial features on lanes
    (all lane widths padded to multiples of 128)."""
    f32 = jnp.float32
    bf16 = jnp.bfloat16

    # Linear(24,32) + ReLU (tiny K=24: keep f32)
    h = jnp.dot(x_ref[...], wl_ref[...], preferred_element_type=f32) + bl_ref[...]
    h = jnp.maximum(h, 0.0)

    # Unflatten(1,(8,2,2)) + MaxUnpool2d((2,2)) #0 : (TB,32) -> (TB,256)
    #   upsample via 0/1 gather matmul, then keep argmax positions via the
    #   precomputed per-sample 0/1 mask.
    xu0 = jnp.dot(h.astype(bf16), g0_ref[...], preferred_element_type=f32)
    z0 = xu0 * mk0_ref[...]

    # ConvTranspose2d(8,4,(3,3),(1,1)) + ReLU as one dense matmul: (TB,256)@(256,256)
    h1 = jnp.dot(z0.astype(bf16), m1_ref[...], preferred_element_type=f32) + b1_ref[...]
    h1 = jnp.maximum(h1, 0.0)

    # MaxUnpool2d((2,2)) #1 : (TB,256) -> (TB,896)
    xu1 = jnp.dot(h1.astype(bf16), g1_ref[...], preferred_element_type=f32)
    z1 = xu1 * mk1_ref[...]

    # ConvTranspose2d(4,1,(3,3),(1,1)) + ReLU: (TB,896)@(896,256)
    out = jnp.dot(z1.astype(bf16), m2_ref[...], preferred_element_type=f32) + b2_ref[...]
    o_ref[...] = jnp.maximum(out, 0.0).astype(o_ref.dtype)


# ------------------------------------------------------------------
# One-time parameter / constant preprocessing (hoisted out of forward)
# ------------------------------------------------------------------
def _unpool_gather_matrix(h, w, H, W):
    """(h*w, H*W) 0/1 matrix: pooled cell (i,j) -> every output position whose
    2x2 window is (i,j).  Output positions beyond 2h/2w get an all-zero column."""
    oy = jnp.arange(H)
    ox = jnp.arange(W)
    src = jnp.where((oy[:, None] < 2 * h) & (ox[None, :] < 2 * w),
                    (oy[:, None] // 2) * w + (ox[None, :] // 2), -1).reshape(-1)
    return (jnp.arange(h * w)[:, None] == src[None, :]).astype(jnp.float32)


def _convt_dense_matrix(w, H, W):
    """ConvTranspose2d(stride=1) as a dense matrix.
    w:(Cin,Cout,K,K)  ->  M:(Cin*H*W, Cout*Ho*Wo) with Ho=H+K-1, Wo=W+K-1."""
    Cin, Cout, K, _ = w.shape
    Ho, Wo = H + K - 1, W + K - 1
    ky = jnp.arange(Ho)[None, :] - jnp.arange(H)[:, None]     # (H, Ho)
    kx = jnp.arange(Wo)[None, :] - jnp.arange(W)[:, None]     # (W, Wo)
    oy_k = jax.nn.one_hot(ky, K, dtype=w.dtype)               # zero row when out of range
    ox_k = jax.nn.one_hot(kx, K, dtype=w.dtype)
    # M[ci,y,x,co,oy,ox] = w[ci,co,oy-y,ox-x] (valid taps only)
    m = jnp.einsum("cokl,yak,xbl->cyxoab", w, oy_k, ox_k)
    return m.reshape(Cin * H * W, Cout * Ho * Wo)


def prepare_decoder(params, down_sampling_spatial):
    """Precompute MXU-friendly (bf16, lane-padded) weights / gather matrices once."""
    f32, bf16 = jnp.float32, jnp.bfloat16
    (H0, W0), (H1, W1) = down_sampling_spatial
    C0 = params["ct1_w"].shape[0]            # 8: channels entering unpool #0
    C1 = params["ct1_w"].shape[1]            # 4: channels entering unpool #1
    Cout = params["ct2_w"].shape[1]          # 1
    h0, w0 = SPATIAL                         # pooled spatial before unpool #0
    h1, w1 = H0 + 2, W0 + 2                  # pooled spatial before unpool #1

    n0 = C0 * H0 * W0                        # 200
    n1 = C1 * (H0 + 2) * (W0 + 2)            # 196
    n2 = C1 * H1 * W1                        # 784
    n_out = Cout * (H1 + 2) * (W1 + 2)       # 256
    n0p, n1p, n2p, n_outp = (_rup(n0, LANE), _rup(n1, LANE),
                             _rup(n2, LANE), _rup(n_out, LANE))

    g0 = jnp.kron(jnp.eye(C0, dtype=f32), _unpool_gather_matrix(h0, w0, H0, W0))
    g0 = jnp.pad(g0, ((0, 0), (0, n0p - n0)))                            # (32, 256)
    g1 = jnp.kron(jnp.eye(C1, dtype=f32), _unpool_gather_matrix(h1, w1, H1, W1))
    g1 = jnp.pad(g1, ((0, n1p - n1), (0, n2p - n2)))                     # (256, 896)

    m1 = _convt_dense_matrix(params["ct1_w"].astype(f32), H0, W0)        # (200, 196)
    m1 = jnp.pad(m1, ((0, n0p - n0), (0, n1p - n1)))                     # (256, 256)
    b1e = jnp.repeat(params["ct1_b"].astype(f32), (H0 + 2) * (W0 + 2))
    b1e = jnp.pad(b1e, (0, n1p - n1)).reshape(1, -1)                     # (1, 256)

    m2 = _convt_dense_matrix(params["ct2_w"].astype(f32), H1, W1)        # (784, 256)
    m2 = jnp.pad(m2, ((0, n2p - n2), (0, n_outp - n_out)))               # (896, 256)
    b2e = jnp.repeat(params["ct2_b"].astype(f32), (H1 + 2) * (W1 + 2))
    b2e = jnp.pad(b2e, (0, n_outp - n_out)).reshape(1, -1)               # (1, 256)

    return {
        "wl": params["lin_w"].T.astype(f32),                             # (24, 32)
        "bl": params["lin_b"].reshape(1, -1).astype(f32),
        "g0": g0.astype(bf16), "m1": m1.astype(bf16), "b1e": b1e,
        "g1": g1.astype(bf16), "m2": m2.astype(bf16), "b2e": b2e,
        "unpool0": (C0, h0, w0, H0, W0, n0p),
        "unpool1": (C1, h1, w1, H1, W1, n2p),
        "n_out": n_out,
        "out_channels": Cout,
        "out_spatial": (H1 + 2, W1 + 2),
    }


def _unpool_mask(idx, C, h, w, H, W, pad_to):
    """MaxPool2d(2) argmax indices (B,C,h,w) int32 -> bf16 0/1 mask over the
    flattened (C*H*W) unpool output, zero-padded to `pad_to` lanes."""
    B = idx.shape[0]
    oh = jax.nn.one_hot(idx.reshape(B, C, h * w), H * W, dtype=jnp.float32)
    mask = oh.sum(axis=2).reshape(B, C * H * W)
    return jnp.pad(mask, ((0, 0), (0, pad_to - C * H * W))).astype(jnp.bfloat16)


def _pick_batch_tile(B):
    """Multiple-of-16 batch tile in [16, 256]; >=2 grid steps once B > 16 so the
    parallel grid axis can shard across v7x's two TensorCores."""
    if B <= 16:
        return _rup(max(B, 1), 16)
    return max(16, min(256, _rup(-(-B // 2), 16)))


# ------------------------------------------------------------------
# Decoder forward (single fused pallas_call)
# ------------------------------------------------------------------
def decoder_forward(prep, x, pool_indices):
    f32 = jnp.float32
    B = x.shape[0]
    x = x.astype(f32)

    C0, h0, w0, H0, W0, n0p = prep["unpool0"]
    C1, h1, w1, H1, W1, n2p = prep["unpool1"]
    mk0 = _unpool_mask(pool_indices[0], C0, h0, w0, H0, W0, n0p)   # (B, 256) bf16
    mk1 = _unpool_mask(pool_indices[1], C1, h1, w1, H1, W1, n2p)   # (B, 896) bf16

    Cout = prep["out_channels"]
    Ho, Wo = prep["out_spatial"]
    n_out = prep["n_out"]
    n_outp = prep["m2"].shape[1]

    TB = _pick_batch_tile(B)
    Bpad = _rup(B, TB)
    if Bpad != B:
        pad = Bpad - B
        x = jnp.pad(x, ((0, pad), (0, 0)))
        mk0 = jnp.pad(mk0, ((0, pad), (0, 0)))
        mk1 = jnp.pad(mk1, ((0, pad), (0, 0)))
    grid = (Bpad // TB,)

    def row_spec(n):
        return pl.BlockSpec((TB, n), lambda i: (i, 0))

    def const_spec(a):
        # constant across the grid -> single-buffered (no redundant DMA buffer)
        return pl.BlockSpec(a.shape, lambda i: (0,) * a.ndim,
                            pipeline_mode=pl.Buffered(1))

    const_names = ("wl", "bl", "g0", "m1", "b1e", "g1", "m2", "b2e")
    consts = [prep[k] for k in const_names]

    def mm_flops(shape):
        return 2 * shape[0] * shape[1]

    flops = Bpad * (mm_flops(prep["wl"].shape) + mm_flops(prep["g0"].shape)
                    + mm_flops(prep["m1"].shape) + mm_flops(prep["g1"].shape)
                    + mm_flops(prep["m2"].shape))
    bytes_accessed = (int(x.size + Bpad * n_outp) * 4
                      + int(mk0.size + mk1.size) * 2
                      + sum(int(c.size) * c.dtype.itemsize for c in consts))

    out2 = pl.pallas_call(
        _decoder_kernel,
        out_shape=jax.ShapeDtypeStruct((Bpad, n_outp), f32),
        grid=grid,
        in_specs=[row_spec(x.shape[1]), row_spec(mk0.shape[1]), row_spec(mk1.shape[1])]
                 + [const_spec(c) for c in consts],
        out_specs=row_spec(n_outp),
        compiler_params=pltpu.CompilerParams(dimension_semantics=("parallel",)),
        cost_estimate=pl.CostEstimate(flops=int(flops), transcendentals=0,
                                      bytes_accessed=int(bytes_accessed)),
    )(x, mk0, mk1, *consts)

    # drop batch / lane padding; contiguous reshape back to NCHW
    return out2[:B, :n_out].reshape(B, Cout, Ho, Wo)


# ------------------------------------------------------------------
# Pure-JAX reference (for correctness check only)
# ------------------------------------------------------------------
def _unpool_ref(x, idx, out_spatial):
    B, C, h, w = x.shape
    H, W = out_spatial
    xf = x.reshape(B * C, h * w)
    idxf = idx.reshape(B * C, h * w)
    out = jnp.zeros((B * C, H * W), x.dtype)
    out = out.at[jnp.arange(B * C)[:, None], idxf].set(xf)
    return out.reshape(B, C, H, W)


def _conv_t_ref(x, w, b):
    K = w.shape[2]
    xp = jnp.pad(x, ((0, 0), (0, 0), (K - 1, K - 1), (K - 1, K - 1)))
    wflip = jnp.transpose(w[:, :, ::-1, ::-1], (1, 0, 2, 3))     # OIHW
    y = lax.conv_general_dilated(xp, wflip, (1, 1), "VALID",
                                 dimension_numbers=("NCHW", "OIHW", "NCHW"))
    return y + b[None, :, None, None]


def decoder_forward_ref(params, x, pool_indices, down_sampling_spatial):
    B = x.shape[0]
    y = jnp.maximum(x @ params["lin_w"].T + params["lin_b"], 0.0)
    y = y.reshape(B, FILTER, SPATIAL[0], SPATIAL[1])
    y = _unpool_ref(y, pool_indices[0], down_sampling_spatial[0])
    y = jnp.maximum(_conv_t_ref(y, params["ct1_w"], params["ct1_b"]), 0.0)
    y = _unpool_ref(y, pool_indices[1], down_sampling_spatial[1])
    y = jnp.maximum(_conv_t_ref(y, params["ct2_w"], params["ct2_b"]), 0.0)
    return y


# ------------------------------------------------------------------
# Deterministic parameter / input construction
# ------------------------------------------------------------------
def init_params(key):
    ks = jax.random.split(key, 6)

    def u(k, shape, fan_in):
        bound = 1.0 / jnp.sqrt(float(fan_in))
        return jax.random.uniform(k, shape, jnp.float32, -bound, bound)

    return {
        # nn.Linear(24, 32): weight (out,in) = (32,24)
        "lin_w": u(ks[0], (32, DEC_IN_FEATURES), DEC_IN_FEATURES),
        "lin_b": u(ks[1], (32,), DEC_IN_FEATURES),
        # nn.ConvTranspose2d(8, 4, (3,3), (1,1)): weight (Cin,Cout,3,3)
        "ct1_w": u(ks[2], (8, 4, 3, 3), 8 * 9),
        "ct1_b": u(ks[3], (4,), 8 * 9),
        # nn.ConvTranspose2d(4, 1, (3,3), (1,1))
        "ct2_w": u(ks[4], (4, 1, 3, 3), 4 * 9),
        "ct2_b": u(ks[5], (1,), 4 * 9),
    }


def make_pool_indices(key, B, C, h, w, H, W):
    """Valid MaxPool2d(2) argmax indices (flattened over the HxW pre-pool map)."""
    k1, k2 = jax.random.split(key)
    di = jax.random.randint(k1, (B, C, h, w), 0, 2)
    dj = jax.random.randint(k2, (B, C, h, w), 0, 2)
    rows = 2 * jnp.arange(h)[None, None, :, None] + di
    cols = 2 * jnp.arange(w)[None, None, None, :] + dj
    return (rows * W + cols).astype(jnp.int32)


if __name__ == "__main__":
    key = jax.random.PRNGKey(0)
    kp, kx, ki0, ki1 = jax.random.split(key, 4)

    B = 2
    params = init_params(kp)
    x = jax.random.normal(kx, (B, DEC_IN_FEATURES), jnp.float32)

    # Emulation of __C_Decoder__._down_sampling_spatial / ._pooling_indices
    down_sampling_spatial = [(5, 5), (14, 14)]
    pool_indices = [
        make_pool_indices(ki0, B, 8, 2, 2, 5, 5),    # used by first MaxUnpool2d
        make_pool_indices(ki1, B, 4, 7, 7, 14, 14),  # used by second MaxUnpool2d
    ]

    prep = prepare_decoder(params, down_sampling_spatial)   # one-time weight prep
    out = decoder_forward(prep, x, pool_indices)
    out = jax.block_until_ready(out)

    ref = decoder_forward_ref(params, x, pool_indices, down_sampling_spatial)
    assert out.shape == (B, 1, 16, 16), out.shape
    assert bool(jnp.all(jnp.isfinite(out)))
    assert bool(jnp.allclose(out, ref, atol=1e-2, rtol=1e-2)), \
        float(jnp.max(jnp.abs(out - ref)))

    print("KERNEL_OK")
</pallas_src>

<mosaic_0001>
module attributes {stable_mosaic.version = 11 : i64} {
  func.func @_decoder_kernel(%arg0: i32, %arg1: memref<16x24xf32, #tpu.memory_space<vmem>>, %arg2: memref<16x256xbf16, #tpu.memory_space<vmem>>, %arg3: memref<16x896xbf16, #tpu.memory_space<vmem>>, %arg4: memref<24x32xf32, #tpu.memory_space<vmem>>, %arg5: memref<1x32xf32, #tpu.memory_space<vmem>>, %arg6: memref<32x256xbf16, #tpu.memory_space<vmem>>, %arg7: memref<256x256xbf16, #tpu.memory_space<vmem>>, %arg8: memref<1x256xf32, #tpu.memory_space<vmem>>, %arg9: memref<256x896xbf16, #tpu.memory_space<vmem>>, %arg10: memref<896x256xbf16, #tpu.memory_space<vmem>>, %arg11: memref<1x256xf32, #tpu.memory_space<vmem>>, %arg12: memref<16x256xf32, #tpu.memory_space<vmem>>) attributes {dimension_semantics = [#tpu.dimension_semantics<parallel>], iteration_bounds = array<i64: 1>, scalar_prefetch = 0 : i64, scratch_operands = 0 : i64, tpu.core_type = #tpu.core_type<tc>, window_params = [{transform_indices = @transform_0, window_bounds = array<i64: 16, 24>}, {transform_indices = @transform_1, window_bounds = array<i64: 16, 256>}, {transform_indices = @transform_2, window_bounds = array<i64: 16, 896>}, {pipeline_mode = #tpu.pipeline_mode<synchronous>, transform_indices = @transform_3, window_bounds = array<i64: 24, 32>}, {pipeline_mode = #tpu.pipeline_mode<synchronous>, transform_indices = @transform_4, window_bounds = array<i64: 1, 32>}, {pipeline_mode = #tpu.pipeline_mode<synchronous>, transform_indices = @transform_5, window_bounds = array<i64: 32, 256>}, {pipeline_mode = #tpu.pipeline_mode<synchronous>, transform_indices = @transform_6, window_bounds = array<i64: 256, 256>}, {pipeline_mode = #tpu.pipeline_mode<synchronous>, transform_indices = @transform_7, window_bounds = array<i64: 1, 256>}, {pipeline_mode = #tpu.pipeline_mode<synchronous>, transform_indices = @transform_8, window_bounds = array<i64: 256, 896>}, {pipeline_mode = #tpu.pipeline_mode<synchronous>, transform_indices = @transform_9, window_bounds = array<i64: 896, 256>}, {pipeline_mode = #tpu.pipeline_mode<synchronous>, transform_indices = @transform_10, window_bounds = array<i64: 1, 256>}, {transform_indices = @transform_11, window_bounds = array<i64: 16, 256>}]} {
    %c0 = arith.constant 0 : index
    %c0_0 = arith.constant 0 : index
    %0 = vector.load %arg1[%c0, %c0_0] : memref<16x24xf32, #tpu.memory_space<vmem>>, vector<16x24xf32>
    %c0_1 = arith.constant 0 : index
    %c0_2 = arith.constant 0 : index
    %1 = vector.load %arg4[%c0_1, %c0_2] : memref<24x32xf32, #tpu.memory_space<vmem>>, vector<24x32xf32>
    %cst = arith.constant dense<0.000000e+00> : vector<16x32xf32>
    %2 = tpu.matmul %0, %1, %cst {dimension_numbers = #tpu.dot_dimension_numbers<[1], [0], [0], [1], [0, 0, 1, 1], [], []>} : vector<16x24xf32>, vector<24x32xf32>, vector<16x32xf32> -> vector<16x32xf32>
    %c0_3 = arith.constant 0 : index
    %c0_4 = arith.constant 0 : index
    %3 = vector.load %arg5[%c0_3, %c0_4] : memref<1x32xf32, #tpu.memory_space<vmem>>, vector<1x32xf32>
    %4 = vector.broadcast %3 : vector<1x32xf32> to vector<16x32xf32>
    %5 = arith.addf %2, %4 : vector<16x32xf32>
    %cst_5 = arith.constant 0.000000e+00 : f32
    %6 = vector.broadcast %cst_5 : f32 to vector<16x32xf32>
    %7 = arith.maximumf %5, %6 : vector<16x32xf32>
    %8 = arith.truncf %7 : vector<16x32xf32> to vector<16x32xbf16>
    %c0_6 = arith.constant 0 : index
    %c0_7 = arith.constant 0 : index
    %9 = vector.load %arg6[%c0_6, %c0_7] : memref<32x256xbf16, #tpu.memory_space<vmem>>, vector<32x256xbf16>
    %cst_8 = arith.constant dense<0.000000e+00> : vector<16x256xf32>
    %10 = tpu.matmul %8, %9, %cst_8 {dimension_numbers = #tpu.dot_dimension_numbers<[1], [0], [0], [1], [0, 0, 1, 1], [], []>} : vector<16x32xbf16>, vector<32x256xbf16>, vector<16x256xf32> -> vector<16x256xf32>
    %c0_9 = arith.constant 0 : index
    %c0_10 = arith.constant 0 : index
    %11 = vector.load %arg2[%c0_9, %c0_10] : memref<16x256xbf16, #tpu.memory_space<vmem>>, vector<16x256xbf16>
    %12 = arith.extf %11 : vector<16x256xbf16> to vector<16x256xf32>
    %13 = arith.mulf %10, %12 : vector<16x256xf32>
    %14 = arith.truncf %13 : vector<16x256xf32> to vector<16x256xbf16>
    %c0_11 = arith.constant 0 : index
    %c0_12 = arith.constant 0 : index
    %15 = vector.load %arg7[%c0_11, %c0_12] : memref<256x256xbf16, #tpu.memory_space<vmem>>, vector<256x256xbf16>
    %cst_13 = arith.constant dense<0.000000e+00> : vector<16x256xf32>
    %16 = tpu.matmul %14, %15, %cst_13 {dimension_numbers = #tpu.dot_dimension_numbers<[1], [0], [0], [1], [0, 0, 1, 1], [], []>} : vector<16x256xbf16>, vector<256x256xbf16>, vector<16x256xf32> -> vector<16x256xf32>
    %c0_14 = arith.constant 0 : index
    %c0_15 = arith.constant 0 : index
    %17 = vector.load %arg8[%c0_14, %c0_15] : memref<1x256xf32, #tpu.memory_space<vmem>>, vector<1x256xf32>
    %18 = vector.broadcast %17 : vector<1x256xf32> to vector<16x256xf32>
    %19 = arith.addf %16, %18 : vector<16x256xf32>
    %cst_16 = arith.constant 0.000000e+00 : f32
    %20 = vector.broadcast %cst_16 : f32 to vector<16x256xf32>
    %21 = arith.maximumf %19, %20 : vector<16x256xf32>
    %22 = arith.truncf %21 : vector<16x256xf32> to vector<16x256xbf16>
    %c0_17 = arith.constant 0 : index
    %c0_18 = arith.constant 0 : index
    %23 = vector.load %arg9[%c0_17, %c0_18] : memref<256x896xbf16, #tpu.memory_space<vmem>>, vector<256x896xbf16>
    %cst_19 = arith.constant dense<0.000000e+00> : vector<16x896xf32>
    %24 = tpu.matmul %22, %23, %cst_19 {dimension_numbers = #tpu.dot_dimension_numbers<[1], [0], [0], [1], [0, 0, 1, 1], [], []>} : vector<16x256xbf16>, vector<256x896xbf16>, vector<16x896xf32> -> vector<16x896xf32>
    %c0_20 = arith.constant 0 : index
    %c0_21 = arith.constant 0 : index
    %25 = vector.load %arg3[%c0_20, %c0_21] : memref<16x896xbf16, #tpu.memory_space<vmem>>, vector<16x896xbf16>
    %26 = arith.extf %25 : vector<16x896xbf16> to vector<16x896xf32>
    %27 = arith.mulf %24, %26 : vector<16x896xf32>
    %28 = arith.truncf %27 : vector<16x896xf32> to vector<16x896xbf16>
    %c0_22 = arith.constant 0 : index
    %c0_23 = arith.constant 0 : index
    %29 = vector.load %arg10[%c0_22, %c0_23] : memref<896x256xbf16, #tpu.memory_space<vmem>>, vector<896x256xbf16>
    %cst_24 = arith.constant dense<0.000000e+00> : vector<16x256xf32>
    %30 = tpu.matmul %28, %29, %cst_24 {dimension_numbers = #tpu.dot_dimension_numbers<[1], [0], [0], [1], [0, 0, 1, 1], [], []>} : vector<16x896xbf16>, vector<896x256xbf16>, vector<16x256xf32> -> vector<16x256xf32>
    %c0_25 = arith.constant 0 : index
    %c0_26 = arith.constant 0 : index
    %31 = vector.load %arg11[%c0_25, %c0_26] : memref<1x256xf32, #tpu.memory_space<vmem>>, vector<1x256xf32>
    %32 = vector.broadcast %31 : vector<1x256xf32> to vector<16x256xf32>
    %33 = arith.addf %30, %32 : vector<16x256xf32>
    %cst_27 = arith.constant 0.000000e+00 : f32
    %34 = vector.broadcast %cst_27 : f32 to vector<16x256xf32>
    %35 = arith.maximumf %33, %34 : vector<16x256xf32>
    %c0_28 = arith.constant 0 : index
    %c0_29 = arith.constant 0 : index
    %36 = vector.load %arg12[%c0_28, %c0_29] : memref<16x256xf32, #tpu.memory_space<vmem>>, vector<16x256xf32>
    tpu.vector_store %arg12[%c0_28, %c0_29], %35 {strides = array<i32>} : memref<16x256xf32, #tpu.memory_space<vmem>>, vector<16x256xf32>,
    return
  }
  func.func @transform_0(%arg0: i32) -> (i32, i32) {
    %c0_i32 = arith.constant 0 : i32
    %c0_i32_0 = arith.constant 0 : i32
    return %arg0, %c0_i32 : i32, i32
  }
  func.func @transform_1(%arg0: i32) -> (i32, i32) {
    %c0_i32 = arith.constant 0 : i32
    %c0_i32_0 = arith.constant 0 : i32
    return %arg0, %c0_i32 : i32, i32
  }
  func.func @transform_2(%arg0: i32) -> (i32, i32) {
    %c0_i32 = arith.constant 0 : i32
    %c0_i32_0 = arith.constant 0 : i32
    return %arg0, %c0_i32 : i32, i32
  }
  func.func @transform_3(%arg0: i32) -> (i32, i32) {
    %c0_i32 = arith.constant 0 : i32
    %c0_i32_0 = arith.constant 0 : i32
    %c0_i32_1 = arith.constant 0 : i32
    return %c0_i32, %c0_i32_0 : i32, i32
  }
  func.func @transform_4(%arg0: i32) -> (i32, i32) {
    %c0_i32 = arith.constant 0 : i32
    %c0_i32_0 = arith.constant 0 : i32
    %c0_i32_1 = arith.constant 0 : i32
    return %c0_i32, %c0_i32_0 : i32, i32
  }
  func.func @transform_5(%arg0: i32) -> (i32, i32) {
    %c0_i32 = arith.constant 0 : i32
    %c0_i32_0 = arith.constant 0 : i32
    %c0_i32_1 = arith.constant 0 : i32
    return %c0_i32, %c0_i32_0 : i32, i32
  }
  func.func @transform_6(%arg0: i32) -> (i32, i32) {
    %c0_i32 = arith.constant 0 : i32
    %c0_i32_0 = arith.constant 0 : i32
    %c0_i32_1 = arith.constant 0 : i32
    return %c0_i32, %c0_i32_0 : i32, i32
  }
  func.func @transform_7(%arg0: i32) -> (i32, i32) {
    %c0_i32 = arith.constant 0 : i32
    %c0_i32_0 = arith.constant 0 : i32
    %c0_i32_1 = arith.constant 0 : i32
    return %c0_i32, %c0_i32_0 : i32, i32
  }
  func.func @transform_8(%arg0: i32) -> (i32, i32) {
    %c0_i32 = arith.constant 0 : i32
    %c0_i32_0 = arith.constant 0 : i32
    %c0_i32_1 = arith.constant 0 : i32
    return %c0_i32, %c0_i32_0 : i32, i32
  }
  func.func @transform_9(%arg0: i32) -> (i32, i32) {
    %c0_i32 = arith.constant 0 : i32
    %c0_i32_0 = arith.constant 0 : i32
    %c0_i32_1 = arith.constant 0 : i32
    return %c0_i32, %c0_i32_0 : i32, i32
  }
  func.func @transform_10(%arg0: i32) -> (i32, i32) {
    %c0_i32 = arith.constant 0 : i32
    %c0_i32_0 = arith.constant 0 : i32
    %c0_i32_1 = arith.constant 0 : i32
    return %c0_i32, %c0_i32_0 : i32, i32
  }
  func.func @transform_11(%arg0: i32) -> (i32, i32) {
    %c0_i32 = arith.constant 0 : i32
    %c0_i32_0 = arith.constant 0 : i32
    return %arg0, %c0_i32 : i32, i32
  }
}

</mosaic_0001>

<bundles_post_ra>
// kernel: tpu_custom_call.1
= control target key start
LH: loop header
LB: loop body
LE: loop exit
PB: predicated region body
PF: predicated region fallthrough
CT: control target
= control target key end

     0   :  { %16 = vsyncpa [#allocation3], 0  ;;  %s4157_s0 = inlined_call_operand.hbm [shape: f32[16,24], index: 0, kind: input, shape index: {}]   ;;  %s4158_s1 = inlined_call_operand.hbm [shape: bf16[16,256], index: 1, kind: input, shape index: {}]   ;;  %s4159_s2 = inlined_call_operand.hbm [shape: bf16[16,896], index: 2, kind: input, shape index: {}]   ;;  %s4160_s3 = inlined_call_operand.hbm [shape: f32[24,32], index: 3, kind: input, shape index: {}]   ;;  %s4161_s4 = inlined_call_operand.hbm [shape: f32[1,32], index: 4, kind: input, shape index: {}]   ;;  %s4162_s5 = inlined_call_operand.hbm [shape: bf16[32,256], index: 5, kind: input, shape index: {}]   ;;  %s4163_s6 = inlined_call_operand.hbm [shape: bf16[256,256], index: 6, kind: input, shape index: {}]   ;;  %s4164_s7 = inlined_call_operand.vmem [shape: f32[1,256], index: 7, kind: input, shape index: {}]   ;;  %s4165_s8 = inlined_call_operand.hbm [shape: bf16[256,896], index: 8, kind: input, shape index: {}]   ;;  %s4166_s9 = inlined_call_operand.hbm [shape: bf16[896,256], index: 9, kind: input, shape index: {}]   ;;  %s4167_s10 = inlined_call_operand.vmem [shape: f32[1,256], index: 10, kind: input, shape index: {}]   ;;  %s4168_s11 = inlined_call_operand.hbm [shape: f32[16,256], index: 11, kind: output, shape index: {}]  }
   0x1   :  { %17 = vsyncpa [#allocation6], 0 }
   0x2   :  { %18 = vsyncpa [#allocation9], 0 }
   0x3   :  { %19 = vsyncpa [#allocation12], 0 }
   0x4   :  { %20 = vsyncpa [#allocation15], 0 }
   0x5   :  { %21 = vsyncpa [#allocation4], 0  ;;  %s39_s19 = sshll.u32 %s4158_s1, 4  ;;  %s3969_s20 = smov [#allocation5]   ;;  %s40_s19 = int_to_ptr.hbm [resolvable:$true] %s39_s19 }
   0x6   :  { %s41_s21 = sshll.u32 %s3969_s20, 4  ;;  %s65_s24 = sshll.u32 %s4160_s3, 4  ;;  %s42_s21 = int_to_ptr.vmem [resolvable:$true] %s41_s21  ;;  %s66_s24 = int_to_ptr.hbm [resolvable:$true] %s65_s24 }
   0x7   :  { %s3970_s25 = smov 128   ;;  %s3971_s26 = smov 8  }
   0x8   :  { %47 = dma.hbm_to_vmem [thread:$0]  %s40_s19, 256, %s42_s21, [#allocation6], %s3970_s25, %s3970_s25, %s3971_s26  }
   0x9   :  { %s3972_s27 = smov [#allocation8]   ;;  %s89_s1 = sshll.u32 %s4162_s5, 4  ;;  %s90_s1 = int_to_ptr.hbm [resolvable:$true] %s89_s1 }
   0xa   :  { %s67_s28 = sshll.u32 %s3972_s27, 4  ;;  %s3973_s3 = smov [#allocation11]   ;;  %s68_s28 = int_to_ptr.vmem [resolvable:$true] %s67_s28 }
   0xb   :  { %73 = dma.hbm_to_vmem [thread:$0]  %s66_s24, 384, %s68_s28, [#allocation9], %s3970_s25, %s3970_s25, %s3971_s26  }
   0xc   :  { %s91_s12 = sshll.u32 %s3973_s3, 4  ;;  %s117_s15 = sshll.u32 %s4165_s8, 4  ;;  %s92_s12 = int_to_ptr.vmem [resolvable:$true] %s91_s12  ;;  %s118_s15 = int_to_ptr.hbm [resolvable:$true] %s117_s15 }
   0xd   :  { %97 = dma.hbm_to_vmem [thread:$0]  %s90_s1, 512, %s92_s12, [#allocation12], %s3970_s25, %s3970_s25, %s3971_s26  }
   0xe   :  { %s3974_s16 = smov [#allocation14]   ;;  %s26_s19 = sshll.u32 %s4157_s0, 4  ;;  %s27_s19 = int_to_ptr.hbm [resolvable:$true] %s26_s19 }
   0xf   :  { %s119_s5 = sshll.u32 %s3974_s16, 4  ;;  %s3975_s20 = smov 448   ;;  %s120_s5 = int_to_ptr.vmem [resolvable:$true] %s119_s5 }
  0x10   :  { %s3976_s21 = smov 28   ;;  %s52_s8 = sshll.u32 %s4159_s2, 4  ;;  %s53_s8 = int_to_ptr.hbm [resolvable:$true] %s52_s8 }
  0x11   :  { %125 = dma.hbm_to_vmem [thread:$0]  %s118_s15, 14336, %s120_s5, [#allocation15], %s3975_s20, %s3975_s20, %s3976_s21  }
  0x12   :  { %s3977_s24 = smov [#allocation2]   ;;  %s3978_s28 = smov [#allocation7]  }
  0x13   :  { %s28_s27 = sshll.u32 %s3977_s24, 4  ;;  %s54_s29 = sshll.u32 %s3978_s28, 4  ;;  %s29_s27 = int_to_ptr.vmem [resolvable:$true] %s28_s27  ;;  %s55_s29 = int_to_ptr.vmem [resolvable:$true] %s54_s29 }
  0x14   :  { %34 = dma.hbm_to_vmem [thread:$0]  %s27_s19, 256, %s29_s27, [#allocation3], %s3970_s25, %s3970_s25, %s3971_s26  }
  0x15   :  { %s79_s1 = sshll.u32 %s4161_s4, 4  ;;  %s102_s2 = sshll.u32 %s4163_s6, 4  ;;  %s80_s1 = int_to_ptr.hbm [resolvable:$true] %s79_s1  ;;  %s103_s2 = int_to_ptr.hbm [resolvable:$true] %s102_s2 }
  0x16   :  { %60 = dma.hbm_to_vmem [thread:$0]  %s53_s8, 896, %s55_s29, [#allocation6], %s3975_s20, %s3975_s20, %s3976_s21  }
  0x17   :  { %s3979_s13 = smov [#allocation10]   ;;  %s3980_s15 = smov [#allocation13]  }
  0x18   :  { %s81_s14 = sshll.u32 %s3979_s13, 4  ;;  %s104_s16 = sshll.u32 %s3980_s15, 4  ;;  %s82_s14 = int_to_ptr.vmem [resolvable:$true] %s81_s14  ;;  %s105_s16 = int_to_ptr.vmem [resolvable:$true] %s104_s16 }
  0x19   :  { %84 = dma.hbm_to_vmem [thread:$0]  %s80_s1, 16, %s82_s14, [#allocation9]  }
  0x1a   :  { %s130_s18 = sshll.u32 %s4166_s9, 4  ;;  %s3981_s4 = smov [#allocation16]   ;;  %s131_s18 = int_to_ptr.hbm [resolvable:$true] %s130_s18 }
  0x1b   :  { %110 = dma.hbm_to_vmem [thread:$0]  %s103_s2, 4096, %s105_s16, [#allocation12], %s3970_s25, %s3970_s25, %s3971_s26  }
  0x1c   :  { %s132_s19 = sshll.u32 %s3981_s4, 4  ;;  %s133_s19 = int_to_ptr.vmem [resolvable:$true] %s132_s19 }
  0x1d   :  { %138 = dma.hbm_to_vmem [thread:$0]  %s131_s18, 14336, %s133_s19, [#allocation15], %s3970_s25, %s3970_s25, %s3971_s26  }
  0x1e   :  { %3957 = dma.done.wait [#allocation3], 256  }
  0x1f   :  { %3958 = vsyncadd [#allocation3], 4294967040 }
  0x20   :  { %3959 = dma.done.wait [#allocation6], 1152  }
  0x21   :  { %3960 = vsyncadd [#allocation6], 4294966144 }
  0x22   :  { %3961 = dma.done.wait [#allocation9], 400  }
  0x23   :  { %3962 = vsyncadd [#allocation9], 4294966896 }
  0x24   :  { %3963 = dma.done.wait [#allocation12], 4608  }
  0x25   :  { %3964 = vsyncadd [#allocation12], 4294962688 }
  0x26   :  { %3965 = dma.done.wait [#allocation15], 28672  }
  0x27   :  { %3966 = vsyncadd [#allocation15], 4294938624  ;;  %v182_v0 = vld [vmem:[#allocation8 + $0x10] sm:$0xff]  ;;  %v181_v1 = vld [vmem:[#allocation8 + $0x8] sm:$0xff]  ;;  %vm187_vm0 = vcmask 195584   ;;  %vm244_vm1 = vcmask 261120  }
  0x28   :  { %207 = vmatpush.msra.mxu0 %v182_v0  ;;  %v180_v2 = vld [vmem:[#allocation8] sm:$0xff]  ;;  %v178_v3 = vld [vmem:[#allocation2] sm:$0xff]  ;;  %v179_v4 = vld [vmem:[#allocation2 + $0x8] sm:$0xff]  ;;  %s2379_s22 = sshll.u32 %s4168_s11, 4  ;;  %s3983_s23 = smov 256   ;;  %s2380_s22 = int_to_ptr.hbm [resolvable:$true] %s2379_s22 }
  0x29   :  { %v2408_v5 = vld [vmem:[#allocation11 + $0x10] sm:$0xf]  ;;  %v3443_v6 = vld [vmem:[#allocation11 + $0x14] sm:$0xf0]  ;;  %v3442_v7 = vld [vmem:[#allocation11 + $0x14] sm:$0xf] }
  0x2a   :  { %208 = vmatpush.msra.mxu0 %v181_v1  ;;  %v2409_v8 = vor.u32 %v3443_v6, %v2408_v5  ;;  %v2410_v9 = vld [vmem:[#allocation11 + $0x18] sm:$0xf0]  ;;  %v2400_v11 = vld [vmem:[#allocation11] sm:$0xf]  ;;  %v3441_v12 = vld [vmem:[#allocation11 + $0x4] sm:$0xf0] }
  0x2b   :  { %v2413_v10 = vor.u32 %v3442_v7, %v2410_v9  ;;  %v3440_v13 = vld [vmem:[#allocation11 + $0x4] sm:$0xf]  ;;  %v2401_v14 = vor.u32 %v3441_v12, %v2400_v11  ;;  %v2402_v15 = vld [vmem:[#allocation11 + $0x8] sm:$0xf0]  ;;  %v2474_v17 = vld [vmem:[#allocation13 + $0x70] sm:$0xf] }
  0x2c   :  { %209 = vmatpush.msra.mxu0 %v180_v2  ;;  %254 = vmatpush.bf16.msra.mxu1 %v2409_v8  ;;  %v2405_v16 = vor.u32 %v3440_v13, %v2402_v15  ;;  %v3459_v18 = vld [vmem:[#allocation13 + $0x74] sm:$0xf0]  ;;  %v3458_v19 = vld [vmem:[#allocation13 + $0x74] sm:$0xf]  ;;  %v2476_v21 = vld [vmem:[#allocation13 + $0x78] sm:$0xf0] }
  0x2d   :  { %2396 = vmatmul.msk.f32.vlgmr.msra.gmra.mxu0 %vm187_vm0, %v178_v3  ;;  %268 = vmatpush.bf16.msra.mxu2 %v2413_v10  ;;  %v2475_v20 = vor.u32 %v3459_v18, %v2474_v17  ;;  %v2466_v22 = vld [vmem:[#allocation13 + $0x60] sm:$0xf]  ;;  %v3457_v23 = vld [vmem:[#allocation13 + $0x64] sm:$0xf0]  ;;  %v2479_v24 = vor.u32 %v3458_v19, %v2476_v21  ;;  %v3456_v25 = vld [vmem:[#allocation13 + $0x64] sm:$0xf] }
  0x2e   :  { %v2468_v26 = vld [vmem:[#allocation13 + $0x68] sm:$0xf0]  ;;  %v2538_v27 = vld [vmem:[#allocation13 + $0xf0] sm:$0xf]  ;;  %v2467_v28 = vor.u32 %v3457_v23, %v2466_v22  ;;  %v3475_v29 = vld [vmem:[#allocation13 + $0xf4] sm:$0xf0] }
  0x2f   :  { %486 = vmatpush.bf16.msra.mxu3 %v2475_v20  ;;  %v3474_v30 = vld [vmem:[#allocation13 + $0xf4] sm:$0xf]  ;;  %v2540_v31 = vld [vmem:[#allocation13 + $0xf8] sm:$0xf0]  ;;  %v2471_v32 = vor.u32 %v3456_v25, %v2468_v26  ;;  %v2539_v33 = vor.u32 %v3475_v29, %v2538_v27  ;;  %v2458_v35 = vld [vmem:[#allocation13 + $0x50] sm:$0xf] }
  0x30   :  { %255 = vmatpush.bf16.msra.mxu1 %v2401_v14  ;;  %v2543_v34 = vor.u32 %v3474_v30, %v2540_v31  ;;  %v3455_v36 = vld [vmem:[#allocation13 + $0x54] sm:$0xf0]  ;;  %v3454_v37 = vld [vmem:[#allocation13 + $0x54] sm:$0xf]  ;;  %v2460_v38 = vld [vmem:[#allocation13 + $0x58] sm:$0xf0] }
  0x31   :  { %269 = vmatpush.bf16.msra.mxu2 %v2405_v16  ;;  %v2530_v39 = vld [vmem:[#allocation13 + $0xe0] sm:$0xf]  ;;  %v3473_v40 = vld [vmem:[#allocation13 + $0xe4] sm:$0xf0]  ;;  %500 = vmatpush.bf16.msrb.mxu0 %v2539_v33  ;;  %v3472_v42 = vld [vmem:[#allocation13 + $0xe4] sm:$0xf]  ;;  %v2459_v44 = vor.u32 %v3455_v36, %v2458_v35  ;;  %v2463_v48 = vor.u32 %v3454_v37, %v2460_v38 }
  0x32   :  { %v2531_v41 = vor.u32 %v3473_v40, %v2530_v39  ;;  %v2532_v43 = vld [vmem:[#allocation13 + $0xe8] sm:$0xf0]  ;;  %v2450_v46 = vld [vmem:[#allocation13 + $0x40] sm:$0xf]  ;;  %v3453_v47 = vld [vmem:[#allocation13 + $0x44] sm:$0xf0] }
  0x33   :  { %487 = vmatpush.bf16.msra.mxu3 %v2467_v28  ;;  %v2535_v45 = vor.u32 %v3472_v42, %v2532_v43  ;;  %v2522_v49 = vld [vmem:[#allocation13 + $0xd0] sm:$0xf]  ;;  %v3471_v50 = vld [vmem:[#allocation13 + $0xd4] sm:$0xf0]  ;;  %v3470_v51 = vld [vmem:[#allocation13 + $0xd4] sm:$0xf]  ;;  %v2451_v57 = vor.u32 %v3453_v47, %v2450_v46 }
  0x34   :  { %514 = vmatpush.bf16.msrb.mxu1 %v2479_v24  ;;  %v3452_v52 = vld [vmem:[#allocation13 + $0x44] sm:$0xf]  ;;  %v2452_v53 = vld [vmem:[#allocation13 + $0x48] sm:$0xf0]  ;;  %v2524_v54 = vld [vmem:[#allocation13 + $0xd8] sm:$0xf0]  ;;  %v2523_v55 = vor.u32 %v3471_v50, %v2522_v49 }
  0x35   :  { %2397 = vmatmul.msk.f32.gmra.mxu0 %vm187_vm0, %v179_v4  ;;  %528 = vmatpush.bf16.msrb.mxu2 %v2543_v34  ;;  %v2527_v56 = vor.u32 %v3470_v51, %v2524_v54  ;;  %v2455_v58 = vor.u32 %v3452_v52, %v2452_v53  ;;  %v2442_v59 = vld [vmem:[#allocation13 + $0x30] sm:$0xf]  ;;  %v3451_v60 = vld [vmem:[#allocation13 + $0x34] sm:$0xf0]  ;;  %v3450_v61 = vld [vmem:[#allocation13 + $0x34] sm:$0xf] }
  0x36   :  { %501 = vmatpush.bf16.msrb.mxu0 %v2531_v41  ;;  %v2444_v62 = vld [vmem:[#allocation13 + $0x38] sm:$0xf0]  ;;  %v2443_v63 = vor.u32 %v3451_v60, %v2442_v59  ;;  %v2514_v9 = vld [vmem:[#allocation13 + $0xc0] sm:$0xf]  ;;  %v3469_v10 = vld [vmem:[#allocation13 + $0xc4] sm:$0xf0] }
  0x37   :  { %488 = vmatpush.bf16.msra.mxu3 %v2459_v44  ;;  %v2447_v0 = vor.u32 %v3450_v61, %v2444_v62  ;;  %v3716_v2 = vld [vmem:[#allocation10] ss:$0 sm:$0xff]  ;;  %v3468_v11 = vld [vmem:[#allocation13 + $0xc4] sm:$0xf]  ;;  %v2515_v12 = vor.u32 %v3469_v10, %v2514_v9  ;;  %v2516_v13 = vld [vmem:[#allocation13 + $0xc8] sm:$0xf0] }
  0x38   :  { %515 = vmatpush.bf16.msrb.mxu1 %v2471_v32  ;;  %v2519_v14 = vor.u32 %v3468_v11, %v2516_v13  ;;  %v2434_v15 = vld [vmem:[#allocation13 + $0x20] sm:$0xf]  ;;  %v3449_v16 = vld [vmem:[#allocation13 + $0x24] sm:$0xf0]  ;;  %v3448_v17 = vld [vmem:[#allocation13 + $0x24] sm:$0xf] }
  0x39   :  { %529 = vmatpush.bf16.msrb.mxu2 %v2535_v45  ;;  %v2435_v18 = vor.u32 %v3449_v16, %v2434_v15  ;;  %v2436_v19 = vld [vmem:[#allocation13 + $0x28] sm:$0xf0]  ;;  %v2506_v21 = vld [vmem:[#allocation13 + $0xb0] sm:$0xf]  ;;  %v3467_v22 = vld [vmem:[#allocation13 + $0xb4] sm:$0xf0] }
  0x3a   :  { %502 = vmatpush.bf16.msrb.mxu0 %v2523_v55  ;;  %v2439_v20 = vor.u32 %v3448_v17, %v2436_v19  ;;  %v3466_v23 = vld [vmem:[#allocation13 + $0xb4] sm:$0xf]  ;;  %v2507_v24 = vor.u32 %v3467_v22, %v2506_v21  ;;  %v2508_v25 = vld [vmem:[#allocation13 + $0xb8] sm:$0xf0]  ;;  %v2426_v27 = vld [vmem:[#allocation13 + $0x10] sm:$0xf] }
  0x3b   :  { %489 = vmatpush.bf16.msra.mxu3 %v2451_v57  ;;  %v2511_v26 = vor.u32 %v3466_v23, %v2508_v25  ;;  %v3447_v28 = vld [vmem:[#allocation13 + $0x14] sm:$0xf0]  ;;  %v3446_v29 = vld [vmem:[#allocation13 + $0x14] sm:$0xf]  ;;  %v2428_v31 = vld [vmem:[#allocation13 + $0x18] sm:$0xf0] }
  0x3c   :  { %516 = vmatpush.bf16.msrb.mxu1 %v2463_v48  ;;  %v2427_v30 = vor.u32 %v3447_v28, %v2426_v27  ;;  %v2431_v32 = vor.u32 %v3446_v29, %v2428_v31  ;;  %v2498_v33 = vld [vmem:[#allocation13 + $0xa0] sm:$0xf]  ;;  %v3465_v34 = vld [vmem:[#allocation13 + $0xa4] sm:$0xf0]  ;;  %v3464_v35 = vld [vmem:[#allocation13 + $0xa4] sm:$0xf] }
  0x3d   :  { %530 = vmatpush.bf16.msrb.mxu2 %v2527_v56  ;;  %v2499_v36 = vor.u32 %v3465_v34, %v2498_v33  ;;  %v2500_v37 = vld [vmem:[#allocation13 + $0xa8] sm:$0xf0]  ;;  %v2418_v39 = vld [vmem:[#allocation13] sm:$0xf]  ;;  %v3445_v40 = vld [vmem:[#allocation13 + $0x4] sm:$0xf0] }
  0x3e   :  { %503 = vmatpush.bf16.msrb.mxu0 %v2515_v12  ;;  %v2503_v38 = vor.u32 %v3464_v35, %v2500_v37  ;;  %v3444_v41 = vld [vmem:[#allocation13 + $0x4] sm:$0xf]  ;;  %v2419_v42 = vor.u32 %v3445_v40, %v2418_v39  ;;  %v2420_v43 = vld [vmem:[#allocation13 + $0x8] sm:$0xf0]  ;;  %v2490_v45 = vld [vmem:[#allocation13 + $0x90] sm:$0xf] }
  0x3f   :  { %490 = vmatpush.bf16.msra.mxu3 %v2443_v63  ;;  %v2423_v44 = vor.u32 %v3444_v41, %v2420_v43  ;;  %v3463_v46 = vld [vmem:[#allocation13 + $0x94] sm:$0xf0]  ;;  %v3462_v47 = vld [vmem:[#allocation13 + $0x94] sm:$0xf]  ;;  %v2492_v49 = vld [vmem:[#allocation13 + $0x98] sm:$0xf0] }
  0x40   :  { %517 = vmatpush.bf16.msrb.mxu1 %v2455_v58  ;;  %v2491_v48 = vor.u32 %v3463_v46, %v2490_v45  ;;  %v2495_v50 = vor.u32 %v3462_v47, %v2492_v49  ;;  %v2482_v51 = vld [vmem:[#allocation13 + $0x80] sm:$0xf]  ;;  %v3461_v52 = vld [vmem:[#allocation13 + $0x84] sm:$0xf0]  ;;  %v3460_v53 = vld [vmem:[#allocation13 + $0x84] sm:$0xf] }
  0x41   :  { %531 = vmatpush.bf16.msrb.mxu2 %v2519_v14  ;;  %v2483_v54 = vor.u32 %v3461_v52, %v2482_v51  ;;  %v2484_v55 = vld [vmem:[#allocation13 + $0x88] sm:$0xf0]  ;;  %v2742_v57 = vld [vmem:[#allocation14 + $0x188] sm:$0xf]  ;;  %v3528_v58 = vld [vmem:[#allocation14 + $0x1a0] sm:$0xf0] }
  0x42   :  { %504 = vmatpush.bf16.msrb.mxu0 %v2507_v24  ;;  %v2487_v56 = vor.u32 %v3460_v53, %v2484_v55  ;;  %v3525_v59 = vld [vmem:[#allocation14 + $0x18c] sm:$0xf]  ;;  %v2743_v60 = vor.u32 %v3528_v58, %v2742_v57  ;;  %v2744_v61 = vld [vmem:[#allocation14 + $0x1a4] sm:$0xf0]  ;;  %v2714_v62 = vld [vmem:[#allocation14 + $0x150] sm:$0xf] }
  0x43   :  { %491 = vmatpush.bf16.msra.mxu3 %v2435_v18  ;;  %v3521_v63 = vld [vmem:[#allocation14 + $0x168] sm:$0xf0]  ;;  %v2686_v11 = vld [vmem:[#allocation14 + $0x118] sm:$0xf]  ;;  %v3514_v12 = vld [vmem:[#allocation14 + $0x130] sm:$0xf0] }
  0x44   :  { %518 = vmatpush.bf16.msrb.mxu1 %v2447_v0  ;;  %v2747_v0 = vor.u32 %v3525_v59, %v2744_v61  ;;  %v2938_v13 = vld [vmem:[#allocation14 + $0x310] sm:$0xf]  ;;  %v3577_v14 = vld [vmem:[#allocation14 + $0x328] sm:$0xf0]  ;;  %v3511_v15 = vld [vmem:[#allocation14 + $0x11c] sm:$0xf] }
  0x45   :  { %532 = vmatpush.bf16.msrb.mxu2 %v2511_v26  ;;  %v2688_v16 = vld [vmem:[#allocation14 + $0x134] sm:$0xf0]  ;;  %v2939_v17 = vor.u32 %v3577_v14, %v2938_v13  ;;  %v3574_v18 = vld [vmem:[#allocation14 + $0x314] sm:$0xf]  ;;  %v2940_v19 = vld [vmem:[#allocation14 + $0x32c] sm:$0xf0] }
  0x46   :  { %505 = vmatpush.bf16.msrb.mxu0 %v2499_v36  ;;  %v2943_v21 = vor.u32 %v3574_v18, %v2940_v19  ;;  %v2910_v22 = vld [vmem:[#allocation14 + $0x2d8] sm:$0xf]  ;;  %v3570_v23 = vld [vmem:[#allocation14 + $0x2f0] sm:$0xf0]  ;;  %v2691_v24 = vor.u32 %v3511_v15, %v2688_v16  ;;  %v2658_v25 = vld [vmem:[#allocation14 + $0xe0] sm:$0xf] }
  0x47   :  { %492 = vmatpush.bf16.msra.mxu3 %v2427_v30  ;;  %v3507_v26 = vld [vmem:[#allocation14 + $0xf8] sm:$0xf0]  ;;  %v2911_v28 = vor.u32 %v3570_v23, %v2910_v22  ;;  %v3504_v29 = vld [vmem:[#allocation14 + $0xe4] sm:$0xf]  ;;  %v2660_v30 = vld [vmem:[#allocation14 + $0xfc] sm:$0xf0] }
  0x48   :  { %519 = vmatpush.bf16.msrb.mxu1 %v2439_v20  ;;  %v2687_v20 = vor.u32 %v3514_v12, %v2686_v11  ;;  %v3567_v27 = vld [vmem:[#allocation14 + $0x2dc] sm:$0xf]  ;;  %v2912_v31 = vld [vmem:[#allocation14 + $0x2f4] sm:$0xf0]  ;;  %v2882_v33 = vld [vmem:[#allocation14 + $0x2a0] sm:$0xf]  ;;  %v2659_v35 = vor.u32 %v3507_v26, %v2658_v25 }
  0x49   :  { %533 = vmatpush.bf16.msrb.mxu2 %v2503_v38  ;;  %v3563_v34 = vld [vmem:[#allocation14 + $0x2b8] sm:$0xf0]  ;;  %v3560_v36 = vld [vmem:[#allocation14 + $0x2a4] sm:$0xf]  ;;  %v2884_v37 = vld [vmem:[#allocation14 + $0x2bc] sm:$0xf0]  ;;  %v2663_v38 = vor.u32 %v3504_v29, %v2660_v30 }
  0x4a   :  { %506 = vmatpush.bf16.msrb.mxu0 %v2491_v48  ;;  %v2630_v39 = vld [vmem:[#allocation14 + $0xa8] sm:$0xf]  ;;  %v3500_v40 = vld [vmem:[#allocation14 + $0xc0] sm:$0xf0]  ;;  %v3497_v43 = vld [vmem:[#allocation14 + $0xac] sm:$0xf]  ;;  %v2887_v46 = vor.u32 %v3560_v36, %v2884_v37 }
  0x4b   :  { %493 = vmatpush.bf16.msra.mxu3 %v2419_v42  ;;  %v2883_v42 = vor.u32 %v3563_v34, %v2882_v33  ;;  %v4090_v45 = vld [vmem:[#allocation5] sm:$0xff]  ;;  %v2854_v47 = vld [vmem:[#allocation14 + $0x268] sm:$0xf]  ;;  %v3553_v51 = vld [vmem:[#allocation14 + $0x26c] sm:$0xf]  ;;  %s3984_s8 = smov 16  }
  0x4c   :  { %520 = vmatpush.bf16.msrb.mxu1 %v2431_v32  ;;  %v2915_v32 = vor.u32 %v3567_v27, %v2912_v31  ;;  %v3556_v48 = vld [vmem:[#allocation14 + $0x280] sm:$0xf0]  ;;  %v2856_v52 = vld [vmem:[#allocation14 + $0x284] sm:$0xf0]  ;;  %v3493_v55 = vld [vmem:[#allocation14 + $0x88] sm:$0xf0]  ;;  %v278_v59 = vunpack.c.l.bf16 %v4090_v45  ;;  %v279_v18 = vunpack.c.h.bf16 %v4090_v45 }
  0x4d   :  { %534 = vmatpush.bf16.msrb.mxu2 %v2495_v50  ;;  %v4092_v49 = vld [vmem:[#allocation5 + $0x8] sm:$0xff]  ;;  %v2631_v50 = vor.u32 %v3500_v40, %v2630_v39  ;;  %v3490_v57 = vld [vmem:[#allocation14 + $0x74] sm:$0xf]  ;;  %v2604_v58 = vld [vmem:[#allocation14 + $0x8c] sm:$0xf0]  ;;  %v2859_v61 = vor.u32 %v3553_v51, %v2856_v52 }
  0x4e   :  { %507 = vmatpush.bf16.msrb.mxu0 %v2483_v54  ;;  %v2602_v54 = vld [vmem:[#allocation14 + $0x70] sm:$0xf]  ;;  %v2798_v13 = vld [vmem:[#allocation14 + $0x1f8] sm:$0xf]  ;;  %v3542_v14 = vld [vmem:[#allocation14 + $0x210] sm:$0xf0] }
  0x4f   :  { %1252 = vmatpush.bf16.msrb.mxu3 %v2743_v60  ;;  %v280_v60 = vunpack.c.l.bf16 %v4092_v49  ;;  %v3479_v22 = vld [vmem:[#allocation14 + $0x18] sm:$0xf0]  ;;  %v2799_v25 = vor.u32 %v3542_v14, %v2798_v13  ;;  %v3476_v26 = vld [vmem:[#allocation14 + $0x4] sm:$0xf]  ;;  %v2548_v27 = vld [vmem:[#allocation14 + $0x1c] sm:$0xf0] }
  0x50   :  { %521 = vmatpush.bf16.msrb.mxu1 %v2423_v44  ;;  %v2632_v44 = vld [vmem:[#allocation14 + $0xc4] sm:$0xf0]  ;;  %v3539_v23 = vld [vmem:[#allocation14 + $0x1fc] sm:$0xf]  ;;  %v3529_v29 = vld [vmem:[#allocation14 + $0x1a8] sm:$0xf0] }
  0x51   :  { %535 = vmatpush.bf16.msrb.mxu2 %v2487_v56  ;;  %v2635_v53 = vor.u32 %v3497_v43, %v2632_v44  ;;  %v2855_v56 = vor.u32 %v3556_v48, %v2854_v47  ;;  %v3526_v30 = vld [vmem:[#allocation14 + $0x194] sm:$0xf]  ;;  %v2752_v31 = vld [vmem:[#allocation14 + $0x1ac] sm:$0xf0]  ;;  %v3535_v36 = vld [vmem:[#allocation14 + $0x1d8] sm:$0xf0]  ;;  %v2551_v43 = vor.u32 %v3476_v26, %v2548_v27 }
  0x52   :  { %v3532_v37 = vld [vmem:[#allocation14 + $0x1c4] sm:$0xf]  ;;  %v2772_v40 = vld [vmem:[#allocation14 + $0x1dc] sm:$0xf0]  ;;  %v3582_v45 = vld [vmem:[#allocation14 + $0x354] sm:$0xf]  ;;  %v2755_v48 = vor.u32 %v3526_v30, %v2752_v31 }
  0x53   :  { %v3522_v51 = vld [vmem:[#allocation14 + $0x170] sm:$0xf0]  ;;  %v2775_v52 = vor.u32 %v3532_v37, %v2772_v40  ;;  %v2668_v13 = vld [vmem:[#allocation14 + $0x104] sm:$0xf0]  ;;  %v2610_v31 = vld [vmem:[#allocation14 + $0x78] sm:$0xf] }
  0x54   :  { %v2612_v37 = vld [vmem:[#allocation14 + $0x94] sm:$0xf0]  ;;  %v3554_v40 = vld [vmem:[#allocation14 + $0x274] sm:$0xf] }
  0xaa   :  { %v211_v1 = vpop.f32.mrf.mxu0 }
  0xab   :  { %v212_v3 = vadd.f32 %v3716_v2, %v211_v1  ;;  %v2966_v1 = vld [vmem:[#allocation14 + $0x348] sm:$0xf] }
  0xad   :  { %v217_v6 = vmax.f32 %v212_v3, 0.0  ;;  %v3518_v3 = vld [vmem:[#allocation14 + $0x154] sm:$0xf] }
  0xb2   :  { %v214_v4 = vpop.f32.mrf.mxu0 }
  0xb3   :  { %v215_v5 = vadd.f32 %v3716_v2, %v214_v4  ;;  %v3584_v2 = vld [vmem:[#allocation14 + $0x360] sm:$0xf0]  ;;  %v2715_v4 = vor.u32 %v3521_v63, %v2714_v62  ;;  %v2826_v62 = vld [vmem:[#allocation14 + $0x230] sm:$0xf]  ;;  %v3549_v63 = vld [vmem:[#allocation14 + $0x248] sm:$0xf0] }
  0xb5   :  { %v218_v7 = vmax.f32 %v215_v5, 0.0  ;;  %v2967_v5 = vor.u32 %v3584_v2, %v2966_v1  ;;  %1253 = vmatpush.bf16.msrb.mxu3 %v2715_v4  ;;  %v2603_v1 = vor.u32 %v3493_v55, %v2602_v54  ;;  %v2574_v2 = vld [vmem:[#allocation14 + $0x38] sm:$0xf]  ;;  %v3486_v4 = vld [vmem:[#allocation14 + $0x50] sm:$0xf0] }
  0xb6   :  { %v2575_v15 = vor.u32 %v3486_v4, %v2574_v2  ;;  %v3519_v54 = vld [vmem:[#allocation14 + $0x15c] sm:$0xf]  ;;  %v2724_v55 = vld [vmem:[#allocation14 + $0x174] sm:$0xf0] }
  0xb7   :  { %v219_v8 = vpack.c.bf16 %v218_v7, %v217_v6  ;;  %v2716_v6 = vld [vmem:[#allocation14 + $0x16c] sm:$0xf0]  ;;  %v3581_v7 = vld [vmem:[#allocation14 + $0x34c] sm:$0xf]  ;;  %1266 = vmatpush.bf16.msra.mxu0 %v2967_v5  ;;  %v3546_v5 = vld [vmem:[#allocation14 + $0x234] sm:$0xf] }
  0xb8   :  { %v2719_v9 = vor.u32 %v3518_v3, %v2716_v6  ;;  %v2607_v3 = vor.u32 %v3490_v57, %v2604_v58  ;;  %v2828_v6 = vld [vmem:[#allocation14 + $0x24c] sm:$0xf0]  ;;  %v2727_v58 = vor.u32 %v3519_v54, %v2724_v55  ;;  %v3575_v4 = vld [vmem:[#allocation14 + $0x31c] sm:$0xf]  ;;  %v2554_v55 = vld [vmem:[#allocation14 + $0x8] sm:$0xf] }
  0xb9   :  { %2414 = vmatmul.msk.bf16.vlgmr.msra.gmra.mxu1 %vm244_vm1, %v219_v8  ;;  %2415 = vmatmul.msk.bf16.vlgmr.msra.gmra.mxu2 %vm244_vm1, %v219_v8  ;;  %v2968_v8 = vld [vmem:[#allocation14 + $0x364] sm:$0xf0]  ;;  %v2831_v16 = vor.u32 %v3546_v5, %v2828_v6  ;;  %v2948_v5 = vld [vmem:[#allocation14 + $0x334] sm:$0xf0] }
  0xba   :  { %1280 = vmatpush.bf16.msra.mxu1 %v2747_v0  ;;  %v2971_v10 = vor.u32 %v3581_v7, %v2968_v8  ;;  %1254 = vmatpush.bf16.msrb.mxu3 %v2687_v20  ;;  %v2827_v8 = vor.u32 %v3549_v63, %v2826_v62  ;;  %v281_v20 = vunpack.c.h.bf16 %v4092_v49  ;;  %v3578_v63 = vld [vmem:[#allocation14 + $0x330] sm:$0xf0]  ;;  %v2951_v6 = vor.u32 %v3575_v4, %v2948_v5  ;;  %v3536_v4 = vld [vmem:[#allocation14 + $0x1e0] sm:$0xf0] }
  0xbb   :  { %1267 = vmatpush.bf16.msra.mxu0 %v2939_v17  ;;  %v2546_v17 = vld [vmem:[#allocation14] sm:$0xf] }
  0xbc   :  { %1294 = vmatpush.bf16.msra.mxu2 %v2971_v10  ;;  %v2576_v10 = vld [vmem:[#allocation14 + $0x54] sm:$0xf0]  ;;  %v2547_v33 = vor.u32 %v3479_v22, %v2546_v17  ;;  %v2920_v17 = vld [vmem:[#allocation14 + $0x2fc] sm:$0xf0] }
  0xbe   :  { %1281 = vmatpush.bf16.msra.mxu1 %v2719_v9  ;;  %1255 = vmatpush.bf16.msrb.mxu3 %v2659_v35  ;;  %v3483_v9 = vld [vmem:[#allocation14 + $0x3c] sm:$0xf]  ;;  %v2770_v35 = vld [vmem:[#allocation14 + $0x1c0] sm:$0xf] }
  0xbf   :  { %1268 = vmatpush.bf16.msra.mxu0 %v2911_v28  ;;  %v2750_v28 = vld [vmem:[#allocation14 + $0x190] sm:$0xf]  ;;  %v2771_v49 = vor.u32 %v3535_v36, %v2770_v35  ;;  %v3557_v35 = vld [vmem:[#allocation14 + $0x288] sm:$0xf0]  ;;  %v3491_v36 = vld [vmem:[#allocation14 + $0x7c] sm:$0xf] }
  0xc0   :  { %1295 = vmatpush.bf16.msra.mxu2 %v2943_v21  ;;  %v2579_v21 = vor.u32 %v3483_v9, %v2576_v10  ;;  %v2751_v44 = vor.u32 %v3529_v29, %v2750_v28  ;;  %v2918_v9 = vld [vmem:[#allocation14 + $0x2e0] sm:$0xf]  ;;  %v3561_v28 = vld [vmem:[#allocation14 + $0x2ac] sm:$0xf]  ;;  %v2892_v29 = vld [vmem:[#allocation14 + $0x2c4] sm:$0xf0] }
  0xc1   :  { %v2895_v30 = vor.u32 %v3561_v28, %v2892_v29 }
  0xc2   :  { %1282 = vmatpush.bf16.msra.mxu1 %v2691_v24  ;;  %1256 = vmatpush.bf16.msrb.mxu3 %v2631_v50  ;;  %v2800_v24 = vld [vmem:[#allocation14 + $0x214] sm:$0xf0] }
  0xc3   :  { %1269 = vmatpush.bf16.msra.mxu0 %v2883_v42  ;;  %v2803_v34 = vor.u32 %v3539_v23, %v2800_v24  ;;  %v3585_v42 = vld [vmem:[#allocation14 + $0x368] sm:$0xf0]  ;;  %v2722_v50 = vld [vmem:[#allocation14 + $0x158] sm:$0xf]  ;;  %v3564_v23 = vld [vmem:[#allocation14 + $0x2c0] sm:$0xf0] }
  0xc4   :  { %1296 = vmatpush.bf16.msra.mxu2 %v2915_v32  ;;  %v2723_v57 = vor.u32 %v3522_v51, %v2722_v50  ;;  %v3498_v24 = vld [vmem:[#allocation14 + $0xb4] sm:$0xf] }
  0xc6   :  { %1283 = vmatpush.bf16.msra.mxu1 %v2663_v38  ;;  %1257 = vmatpush.bf16.msrb.mxu3 %v2603_v1  ;;  %v2696_v1 = vld [vmem:[#allocation14 + $0x13c] sm:$0xf0] }
  0xc7   :  { %1270 = vmatpush.bf16.msra.mxu0 %v2855_v56 }
  0xc8   :  { %1297 = vmatpush.bf16.msra.mxu2 %v2887_v46  ;;  %v2976_v46 = vld [vmem:[#allocation14 + $0x36c] sm:$0xf0] }
  0xc9   :  { %v2979_v56 = vor.u32 %v3582_v45, %v2976_v46  ;;  %v2834_v45 = vld [vmem:[#allocation14 + $0x238] sm:$0xf] }
  0xca   :  { %1284 = vmatpush.bf16.msra.mxu1 %v2635_v53  ;;  %1258 = vmatpush.bf16.msrb.mxu3 %v2575_v15 }
  0xcb   :  { %1271 = vmatpush.bf16.msra.mxu0 %v2827_v8  ;;  %v3508_v8 = vld [vmem:[#allocation14 + $0x100] sm:$0xf0] }
  0xcc   :  { %1298 = vmatpush.bf16.msra.mxu2 %v2859_v61  ;;  %v2946_v61 = vld [vmem:[#allocation14 + $0x318] sm:$0xf] }
  0xcd   :  { %v2947_v2 = vor.u32 %v3578_v63, %v2946_v61  ;;  %v2556_v61 = vld [vmem:[#allocation14 + $0x24] sm:$0xf0] }
  0xce   :  { %1285 = vmatpush.bf16.msra.mxu1 %v2607_v3  ;;  %1259 = vmatpush.bf16.msrb.mxu3 %v2547_v33  ;;  %v2862_v33 = vld [vmem:[#allocation14 + $0x270] sm:$0xf] }
  0xcf   :  { %1272 = vmatpush.bf16.msra.mxu0 %v2799_v25  ;;  %v2640_v25 = vld [vmem:[#allocation14 + $0xcc] sm:$0xf0] }
  0xd0   :  { %1299 = vmatpush.bf16.msra.mxu2 %v2831_v16  ;;  %v3568_v16 = vld [vmem:[#allocation14 + $0x2e4] sm:$0xf]  ;;  %v2643_v27 = vor.u32 %v3498_v24, %v2640_v25  ;;  %v3530_v25 = vld [vmem:[#allocation14 + $0x1b0] sm:$0xf0] }
  0xd2   :  { %1286 = vmatpush.bf16.msra.mxu1 %v2579_v21  ;;  %v2890_v21 = vld [vmem:[#allocation14 + $0x2a8] sm:$0xf] }
  0xd3   :  { %1273 = vmatpush.bf16.msra.mxu0 %v2771_v49  ;;  %v2891_v26 = vor.u32 %v3564_v23, %v2890_v21  ;;  %v2584_v49 = vld [vmem:[#allocation14 + $0x5c] sm:$0xf0] }
  0xd4   :  { %1300 = vmatpush.bf16.msra.mxu2 %v2803_v34 }
  0xd6   :  { %1287 = vmatpush.bf16.msra.mxu1 %v2551_v43  ;;  %v2582_v43 = vld [vmem:[#allocation14 + $0x40] sm:$0xf] }
  0xd8   :  { %1301 = vmatpush.bf16.msra.mxu2 %v2775_v52  ;;  %v3547_v52 = vld [vmem:[#allocation14 + $0x23c] sm:$0xf] }
 0x136   :  { %v257_v41 = vpop.f32.mrf.mxu1 }
 0x137   :  { %v282_v11 = vmul.f32 %v278_v59, %v257_v41  ;;  %v2974_v41 = vld [vmem:[#allocation14 + $0x350] sm:$0xf]  ;;  %v2694_v59 = vld [vmem:[#allocation14 + $0x120] sm:$0xf] }
 0x138   :  { %v2975_v53 = vor.u32 %v3585_v42, %v2974_v41  ;;  %v2864_v41 = vld [vmem:[#allocation14 + $0x28c] sm:$0xf0] }
 0x139   :  { %v2867_v42 = vor.u32 %v3554_v40, %v2864_v41  ;;  %v3586_v40 = vld [vmem:[#allocation14 + $0x370] sm:$0xf0]  ;;  %v3520_v41 = vld [vmem:[#allocation14 + $0x164] sm:$0xf] }
 0x13c   :  { %v271_v0 = vpop.f32.mrf.mxu2 }
 0x13d   :  { %v283_v38 = vmul.f32 %v279_v18, %v271_v0  ;;  %v3512_v0 = vld [vmem:[#allocation14 + $0x124] sm:$0xf]  ;;  %v2923_v18 = vor.u32 %v3568_v16, %v2920_v17 }
 0x13e   :  { %v259_v7 = vpop.f32.mrf.mxu1  ;;  %v2699_v3 = vor.u32 %v3512_v0, %v2696_v1  ;;  %v3540_v0 = vld [vmem:[#allocation14 + $0x204] sm:$0xf]  ;;  %v2808_v1 = vld [vmem:[#allocation14 + $0x21c] sm:$0xf0] }
 0x13f   :  { %v284_v12 = vmul.f32 %v280_v60, %v259_v7  ;;  %v3515_v60 = vld [vmem:[#allocation14 + $0x138] sm:$0xf0]  ;;  %v2666_v7 = vld [vmem:[#allocation14 + $0xe8] sm:$0xf] }
 0x140   :  { %v2695_v62 = vor.u32 %v3515_v60, %v2694_v59  ;;  %v2667_v10 = vor.u32 %v3508_v8, %v2666_v7  ;;  %v3543_v59 = vld [vmem:[#allocation14 + $0x218] sm:$0xf0]  ;;  %v3477_v60 = vld [vmem:[#allocation14 + $0xc] sm:$0xf]  ;;  %v2780_v7 = vld [vmem:[#allocation14 + $0x1e4] sm:$0xf0] }
 0x141   :  { %v286_v19 = vpack.c.bf16 %v284_v12, %v282_v11  ;;  %v3571_v11 = vld [vmem:[#allocation14 + $0x2f8] sm:$0xf0]  ;;  %v3505_v12 = vld [vmem:[#allocation14 + $0xec] sm:$0xf]  ;;  %v2559_v63 = vor.u32 %v3477_v60, %v2556_v61 }
 0x142   :  { %v2919_v14 = vor.u32 %v3571_v11, %v2918_v9  ;;  %v2671_v15 = vor.u32 %v3505_v12, %v2668_v13 }
 0x143   :  { %494 = vmatmul.bf16.vlgmr.msra.gmra.mxu3 %v286_v19  ;;  %522 = vmatmul.bf16.vlgmr.msrb.gmra.mxu1 %v286_v19  ;;  %v2638_v19 = vld [vmem:[#allocation14 + $0xb0] sm:$0xf] }
 0x144   :  { %v273_v32 = vpop.f32.mrf.mxu2  ;;  %1308 = vmatpush.bf16.msra.mxu3 %v2751_v44  ;;  %1336 = vmatpush.bf16.msrb.mxu1 %v2755_v48  ;;  %v3487_v44 = vld [vmem:[#allocation14 + $0x58] sm:$0xf0]  ;;  %v3484_v48 = vld [vmem:[#allocation14 + $0x44] sm:$0xf] }
 0x145   :  { %v285_v39 = vmul.f32 %v281_v20, %v273_v32  ;;  %v3501_v20 = vld [vmem:[#allocation14 + $0xc8] sm:$0xf0]  ;;  %v3494_v32 = vld [vmem:[#allocation14 + $0x90] sm:$0xf0]  ;;  %v2583_v46 = vor.u32 %v3487_v44, %v2582_v43  ;;  %v2587_v51 = vor.u32 %v3484_v48, %v2584_v49  ;;  %v3583_v43 = vld [vmem:[#allocation14 + $0x35c] sm:$0xf] }
 0x146   :  { %v2639_v22 = vor.u32 %v3501_v20, %v2638_v19  ;;  %v2611_v34 = vor.u32 %v3494_v32, %v2610_v31  ;;  %v2984_v44 = vld [vmem:[#allocation14 + $0x374] sm:$0xf0]  ;;  %v2702_v49 = vld [vmem:[#allocation14 + $0x128] sm:$0xf] }
 0x147   :  { %v287_v47 = vpack.c.bf16 %v285_v39, %v283_v38  ;;  %v2863_v38 = vor.u32 %v3557_v35, %v2862_v33  ;;  %v2615_v39 = vor.u32 %v3491_v36, %v2612_v37  ;;  %v2730_v35 = vld [vmem:[#allocation14 + $0x160] sm:$0xf]  ;;  %v3523_v36 = vld [vmem:[#allocation14 + $0x178] sm:$0xf0] }
 0x148   :  { %1309 = vmatpush.bf16.msra.mxu3 %v2723_v57  ;;  %1337 = vmatpush.bf16.msrb.mxu1 %v2727_v58  ;;  %v2806_v57 = vld [vmem:[#allocation14 + $0x200] sm:$0xf] }
 0x149   :  { %508 = vmatmul.bf16.vlgmr.msrb.gmra.mxu0 %v287_v47  ;;  %536 = vmatmul.bf16.vlgmr.msrb.gmra.mxu2 %v287_v47  ;;  %v3550_v47 = vld [vmem:[#allocation14 + $0x250] sm:$0xf0] }
 0x14a   :  { %1322 = vmatpush.bf16.msrb.mxu0 %v2975_v53  ;;  %1350 = vmatpush.bf16.msrb.mxu2 %v2979_v56  ;;  %v2835_v50 = vor.u32 %v3550_v47, %v2834_v45  ;;  %v2836_v53 = vld [vmem:[#allocation14 + $0x254] sm:$0xf0]  ;;  %v3480_v56 = vld [vmem:[#allocation14 + $0x20] sm:$0xf0]  ;;  %v2731_v47 = vor.u32 %v3523_v36, %v2730_v35 }
 0x14b   :  { %v2839_v54 = vor.u32 %v3547_v52, %v2836_v53  ;;  %v2555_v58 = vor.u32 %v3480_v56, %v2554_v55  ;;  %v2987_v53 = vor.u32 %v3583_v43, %v2984_v44  ;;  %v3579_v55 = vld [vmem:[#allocation14 + $0x338] sm:$0xf0]  ;;  %v3513_v56 = vld [vmem:[#allocation14 + $0x12c] sm:$0xf]  ;;  %v3488_v35 = vld [vmem:[#allocation14 + $0x60] sm:$0xf0] }
 0x14c   :  { %1310 = vmatpush.bf16.msra.mxu3 %v2695_v62  ;;  %1338 = vmatpush.bf16.msrb.mxu1 %v2699_v3  ;;  %v2807_v62 = vor.u32 %v3543_v59, %v2806_v57  ;;  %v2778_v3 = vld [vmem:[#allocation14 + $0x1c8] sm:$0xf]  ;;  %v2956_v59 = vld [vmem:[#allocation14 + $0x33c] sm:$0xf0]  ;;  %v3548_v43 = vld [vmem:[#allocation14 + $0x244] sm:$0xf] }
 0x14d   :  { %v2779_v5 = vor.u32 %v3536_v4, %v2778_v3  ;;  %v2704_v57 = vld [vmem:[#allocation14 + $0x144] sm:$0xf0]  ;;  %v3572_v3 = vld [vmem:[#allocation14 + $0x300] sm:$0xf0]  ;;  %v3506_v4 = vld [vmem:[#allocation14 + $0xf4] sm:$0xf] }
 0x14e   :  { %1323 = vmatpush.bf16.msrb.mxu0 %v2947_v2  ;;  %1351 = vmatpush.bf16.msrb.mxu2 %v2951_v6  ;;  %v2811_v2 = vor.u32 %v3540_v0, %v2808_v1  ;;  %v3533_v6 = vld [vmem:[#allocation14 + $0x1cc] sm:$0xf]  ;;  %v2707_v0 = vor.u32 %v3513_v56, %v2704_v57  ;;  %v2844_v44 = vld [vmem:[#allocation14 + $0x25c] sm:$0xf0]  ;;  %v2816_v57 = vld [vmem:[#allocation14 + $0x224] sm:$0xf0] }
 0x14f   :  { %v2783_v8 = vor.u32 %v3533_v6, %v2780_v7  ;;  %v3569_v6 = vld [vmem:[#allocation14 + $0x2ec] sm:$0xf]  ;;  %v2928_v7 = vld [vmem:[#allocation14 + $0x304] sm:$0xf0] }
 0x150   :  { %1311 = vmatpush.bf16.msra.mxu3 %v2667_v10  ;;  %1339 = vmatpush.bf16.msrb.mxu1 %v2671_v15  ;;  %v320_v10 = vld [vmem:[%s4164_s7] sm:$0x3] }
 0x151   :  { %v322_v13 = vperm.slane %v320_v10, 0  ;;  %v323_v16 = vperm.slane %v320_v10, 1  ;;  %v2646_v10 = vld [vmem:[#allocation14 + $0xb8] sm:$0xf]  ;;  %v3541_v56 = vld [vmem:[#allocation14 + $0x20c] sm:$0xf] }
 0x152   :  { %1324 = vmatpush.bf16.msrb.mxu0 %v2919_v14  ;;  %1352 = vmatpush.bf16.msrb.mxu2 %v2923_v18 }
 0x154   :  { %1312 = vmatpush.bf16.msra.mxu3 %v2639_v22  ;;  %1340 = vmatpush.bf16.msrb.mxu1 %v2643_v27  ;;  %v2758_v22 = vld [vmem:[#allocation14 + $0x198] sm:$0xf] }
 0x155   :  { %v2760_v27 = vld [vmem:[#allocation14 + $0x1b4] sm:$0xf0]  ;;  %v2759_v33 = vor.u32 %v3530_v25, %v2758_v22  ;;  %v2618_v22 = vld [vmem:[#allocation14 + $0x80] sm:$0xf] }
 0x156   :  { %1325 = vmatpush.bf16.msrb.mxu0 %v2891_v26  ;;  %1353 = vmatpush.bf16.msrb.mxu2 %v2895_v30  ;;  %v3527_v26 = vld [vmem:[#allocation14 + $0x19c] sm:$0xf] }
 0x158   :  { %1313 = vmatpush.bf16.msra.mxu3 %v2611_v34  ;;  %1341 = vmatpush.bf16.msrb.mxu1 %v2615_v39  ;;  %v2763_v34 = vor.u32 %v3527_v26, %v2760_v27  ;;  %v2982_v39 = vld [vmem:[#allocation14 + $0x358] sm:$0xf]  ;;  %v3558_v27 = vld [vmem:[#allocation14 + $0x290] sm:$0xf0] }
 0x159   :  { %v2983_v48 = vor.u32 %v3586_v40, %v2982_v39  ;;  %v2870_v26 = vld [vmem:[#allocation14 + $0x278] sm:$0xf]  ;;  %v2842_v39 = vld [vmem:[#allocation14 + $0x240] sm:$0xf]  ;;  %v3551_v40 = vld [vmem:[#allocation14 + $0x258] sm:$0xf0] }
 0x15a   :  { %1326 = vmatpush.bf16.msrb.mxu0 %v2863_v38  ;;  %1354 = vmatpush.bf16.msrb.mxu2 %v2867_v42  ;;  %v2732_v42 = vld [vmem:[#allocation14 + $0x17c] sm:$0xf0] }
 0x15b   :  { %v2735_v52 = vor.u32 %v3520_v41, %v2732_v42  ;;  %v3485_v41 = vld [vmem:[#allocation14 + $0x4c] sm:$0xf]  ;;  %v2592_v42 = vld [vmem:[#allocation14 + $0x64] sm:$0xf0] }
 0x15c   :  { %1314 = vmatpush.bf16.msra.mxu3 %v2583_v46  ;;  %1342 = vmatpush.bf16.msrb.mxu1 %v2587_v51 }
 0x15e   :  { %1327 = vmatpush.bf16.msrb.mxu0 %v2835_v50  ;;  %1355 = vmatpush.bf16.msrb.mxu2 %v2839_v54  ;;  %v3516_v50 = vld [vmem:[#allocation14 + $0x140] sm:$0xf0]  ;;  %v2954_v54 = vld [vmem:[#allocation14 + $0x320] sm:$0xf] }
 0x15f   :  { %v2703_v60 = vor.u32 %v3516_v50, %v2702_v49  ;;  %v2955_v61 = vor.u32 %v3579_v55, %v2954_v54  ;;  %v2595_v49 = vor.u32 %v3485_v41, %v2592_v42  ;;  %v2847_v50 = vor.u32 %v3548_v43, %v2844_v44  ;;  %v3478_v54 = vld [vmem:[#allocation14 + $0x14] sm:$0xf]  ;;  %v2564_v55 = vld [vmem:[#allocation14 + $0x2c] sm:$0xf0]  ;;  %v3615_v43 = vld [vmem:[#allocation16 + $0xd4] sm:$0xf0] }
 0x160   :  { %1315 = vmatpush.bf16.msra.mxu3 %v2555_v58  ;;  %1343 = vmatpush.bf16.msrb.mxu1 %v2559_v63  ;;  %v3576_v58 = vld [vmem:[#allocation14 + $0x324] sm:$0xf]  ;;  %v3509_v63 = vld [vmem:[#allocation14 + $0x108] sm:$0xf0]  ;;  %v3566_v41 = vld [vmem:[#allocation14 + $0x2d0] sm:$0xf0] }
 0x161   :  { %v2959_v1 = vor.u32 %v3576_v58, %v2956_v59  ;;  %v2766_v58 = vld [vmem:[#allocation14 + $0x1a0] sm:$0xf]  ;;  %v3531_v59 = vld [vmem:[#allocation14 + $0x1b8] sm:$0xf0]  ;;  %v3098_v42 = vld [vmem:[#allocation16 + $0xd0] sm:$0xf] }
 0x162   :  { %1328 = vmatpush.bf16.msrb.mxu0 %v2807_v62  ;;  %1356 = vmatpush.bf16.msrb.mxu2 %v2811_v2  ;;  %v2674_v62 = vld [vmem:[#allocation14 + $0xf0] sm:$0xf]  ;;  %v2926_v2 = vld [vmem:[#allocation14 + $0x2e8] sm:$0xf]  ;;  %v2654_v44 = vld [vmem:[#allocation14 + $0xc0] sm:$0xf] }
 0x166   :  { %1329 = vmatpush.bf16.msrb.mxu0 %v2779_v5  ;;  %1357 = vmatpush.bf16.msrb.mxu2 %v2783_v8  ;;  %v2676_v5 = vld [vmem:[#allocation14 + $0x10c] sm:$0xf0]  ;;  %v2675_v8 = vor.u32 %v3509_v63, %v2674_v62  ;;  %v2567_v62 = vor.u32 %v3478_v54, %v2564_v55  ;;  %v2819_v63 = vor.u32 %v3541_v56, %v2816_v57  ;;  %v3559_v54 = vld [vmem:[#allocation14 + $0x298] sm:$0xf0]  ;;  %v3090_v55 = vld [vmem:[#allocation16 + $0xc0] sm:$0xf] }
 0x167   :  { %v3613_v56 = vld [vmem:[#allocation16 + $0xc4] sm:$0xf0] }
 0x168   :  { %v2626_v57 = vld [vmem:[#allocation14 + $0x88] sm:$0xf] }
 0x1c0   :  { %v523_v9 = vpop.f32.mrf.mxu1 }
 0x1c1   :  { %v524_v23 = vadd.f32 %v523_v9, %v323_v16  ;;  %v2927_v9 = vor.u32 %v3572_v3, %v2926_v2  ;;  %v3534_v2 = vld [vmem:[#allocation14 + $0x1d4] sm:$0xf]  ;;  %v2767_v3 = vor.u32 %v3531_v59, %v2766_v58  ;;  %v3496_v58 = vld [vmem:[#allocation14 + $0xa0] sm:$0xf0] }
 0x1c6   :  { %v495_v11 = vpop.f32.mrf.mxu3  ;;  %v509_v12 = vpop.f32.mrf.mxu0 }
 0x1c7   :  { %v496_v14 = vadd.f32 %v495_v11, %v322_v13  ;;  %v3502_v11 = vld [vmem:[#allocation14 + $0xd0] sm:$0xf0] }
 0x1c8   :  { %v525_v20 = vpop.f32.mrf.mxu1 }
 0x1c9   :  { %v510_v18 = vadd.f32 %v509_v12, %v496_v14  ;;  %v526_v29 = vadd.f32 %v525_v20, %v323_v16  ;;  %v2679_v12 = vor.u32 %v3506_v4, %v2676_v5  ;;  %v2898_v14 = vld [vmem:[#allocation14 + $0x2b0] sm:$0xf]  ;;  %v3499_v16 = vld [vmem:[#allocation14 + $0xbc] sm:$0xf]  ;;  %v2647_v20 = vor.u32 %v3502_v11, %v2646_v10  ;;  %v2990_v5 = vld [vmem:[#allocation14 + $0x360] sm:$0xf] }
 0x1ca   :  { %v2788_v4 = vld [vmem:[#allocation14 + $0x1ec] sm:$0xf0] }
 0x1cb   :  { %v542_v28 = vmax.f32 %v510_v18, 0.0  ;;  %v3562_v18 = vld [vmem:[#allocation14 + $0x2b4] sm:$0xf]  ;;  %v2791_v10 = vor.u32 %v3534_v2, %v2788_v4  ;;  %v3552_v2 = vld [vmem:[#allocation14 + $0x260] sm:$0xf0] }
 0x1cc   :  { %v537_v15 = vpop.f32.mrf.mxu2  ;;  %v3611_v4 = vld [vmem:[#allocation16 + $0xb4] sm:$0xf0] }
 0x1cd   :  { %v538_v30 = vadd.f32 %v537_v15, %v524_v23  ;;  %v3565_v15 = vld [vmem:[#allocation14 + $0x2c8] sm:$0xf0]  ;;  %v3495_v23 = vld [vmem:[#allocation14 + $0x98] sm:$0xf0] }
 0x1ce   :  { %v497_v17 = vpop.f32.mrf.mxu3  ;;  %v511_v21 = vpop.f32.mrf.mxu0 }
 0x1cf   :  { %v498_v19 = vadd.f32 %v497_v17, %v322_v13  ;;  %v543_v45 = vmax.f32 %v538_v30, 0.0  ;;  %v2931_v13 = vor.u32 %v3569_v6, %v2928_v7  ;;  %v2648_v17 = vld [vmem:[#allocation14 + $0xd4] sm:$0xf0]  ;;  %v3555_v30 = vld [vmem:[#allocation14 + $0x27c] sm:$0xf] }
 0x1d0   :  { %v3587_v6 = vld [vmem:[#allocation14 + $0x378] sm:$0xf0]  ;;  %v2738_v7 = vld [vmem:[#allocation14 + $0x168] sm:$0xf] }
 0x1d1   :  { %v512_v24 = vadd.f32 %v511_v21, %v498_v19  ;;  %v2900_v19 = vld [vmem:[#allocation14 + $0x2cc] sm:$0xf0]  ;;  %v2899_v21 = vor.u32 %v3565_v15, %v2898_v14  ;;  %v2991_v11 = vor.u32 %v3587_v6, %v2990_v5  ;;  %v3580_v14 = vld [vmem:[#allocation14 + $0x340] sm:$0xf0]  ;;  %v3489_v6 = vld [vmem:[#allocation14 + $0x68] sm:$0xf0] }
 0x1d2   :  { %v2903_v25 = vor.u32 %v3562_v18, %v2900_v19  ;;  %v2710_v15 = vld [vmem:[#allocation14 + $0x130] sm:$0xf]  ;;  %v3603_v18 = vld [vmem:[#allocation16 + $0x74] sm:$0xf0]  ;;  %v3042_v19 = vld [vmem:[#allocation16 + $0x60] sm:$0xf] }
 0x1d3   :  { %v544_v31 = vmax.f32 %v512_v24, 0.0  ;;  %v2651_v24 = vor.u32 %v3499_v16, %v2648_v17  ;;  %v3517_v16 = vld [vmem:[#allocation14 + $0x148] sm:$0xf0]  ;;  %v3050_v17 = vld [vmem:[#allocation16 + $0x70] sm:$0xf] }
 0x1d4   :  { %v539_v32 = vpop.f32.mrf.mxu2  ;;  %v2598_v5 = vld [vmem:[#allocation14 + $0x50] sm:$0xf] }
 0x1d5   :  { %v4101_v37 = vpack.c.bf16 %v544_v31, %v542_v28  ;;  %v540_v38 = vadd.f32 %v539_v32, %v526_v29  ;;  %v3492_v28 = vld [vmem:[#allocation14 + $0x84] sm:$0xf]  ;;  %v2620_v29 = vld [vmem:[#allocation14 + $0x9c] sm:$0xf0]  ;;  %v2872_v31 = vld [vmem:[#allocation14 + $0x294] sm:$0xf0]  ;;  %v2619_v32 = vor.u32 %v3495_v23, %v2618_v22 }
 0x1d6   :  { %v2623_v36 = vor.u32 %v3492_v28, %v2620_v29  ;;  %v3601_v22 = vld [vmem:[#allocation16 + $0x64] sm:$0xf0]  ;;  %v3114_v23 = vld [vmem:[#allocation16 + $0xf0] sm:$0xf]  ;;  %v3106_v29 = vld [vmem:[#allocation16 + $0xe0] sm:$0xf] }
 0x1d7   :  { %v545_v46 = vmax.f32 %v540_v38, 0.0  ;;  %1260 = vmatmul.bf16.vlgmr.msrb.gmra.mxu3 %v4101_v37  ;;  %1288 = vmatmul.bf16.vlgmr.msra.gmra.mxu1 %v4101_v37  ;;  %v2875_v38 = vor.u32 %v3555_v30, %v2872_v31  ;;  %v2682_v30 = vld [vmem:[#allocation14 + $0xf8] sm:$0xf]  ;;  %v3510_v31 = vld [vmem:[#allocation14 + $0x110] sm:$0xf0] }
 0x1d8   :  { %1364 = vmatpush.bf16.msrb.mxu3 %v2759_v33  ;;  %1392 = vmatpush.bf16.msra.mxu1 %v2763_v34  ;;  %v2871_v33 = vor.u32 %v3558_v27, %v2870_v26  ;;  %v2590_v34 = vld [vmem:[#allocation14 + $0x48] sm:$0xf]  ;;  %v2934_v26 = vld [vmem:[#allocation14 + $0x2f0] sm:$0xf]  ;;  %v3573_v27 = vld [vmem:[#allocation14 + $0x308] sm:$0xf0] }
 0x1d9   :  { %v4105_v51 = vpack.c.bf16 %v545_v46, %v543_v45  ;;  %v2591_v45 = vor.u32 %v3488_v35, %v2590_v34  ;;  %v2843_v46 = vor.u32 %v3551_v40, %v2842_v39  ;;  %v3034_v34 = vld [vmem:[#allocation16 + $0x50] sm:$0xf]  ;;  %v3599_v35 = vld [vmem:[#allocation16 + $0x54] sm:$0xf0]  ;;  %v2683_v40 = vor.u32 %v3510_v31, %v2682_v30 }
 0x1da   :  { %v3066_v30 = vld [vmem:[#allocation16 + $0x90] sm:$0xf]  ;;  %v3607_v31 = vld [vmem:[#allocation16 + $0x94] sm:$0xf0] }
 0x1db   :  { %1274 = vmatmul.bf16.vlgmr.msra.gmra.mxu0 %v4105_v51  ;;  %1302 = vmatmul.bf16.vlgmr.msra.gmra.mxu2 %v4105_v51 }
 0x1dc   :  { %1365 = vmatpush.bf16.msrb.mxu3 %v2731_v47  ;;  %1378 = vmatpush.bf16.msra.mxu0 %v2983_v48  ;;  %v2562_v47 = vld [vmem:[#allocation14 + $0x10] sm:$0xf]  ;;  %v3481_v48 = vld [vmem:[#allocation14 + $0x28] sm:$0xf0] }
 0x1dd   :  { %1393 = vmatpush.bf16.msra.mxu1 %v2735_v52  ;;  %1406 = vmatpush.bf16.msra.mxu2 %v2987_v53  ;;  %v2814_v52 = vld [vmem:[#allocation14 + $0x208] sm:$0xf]  ;;  %v3544_v53 = vld [vmem:[#allocation14 + $0x220] sm:$0xf0] }
 0x1e0   :  { %1366 = vmatpush.bf16.msrb.mxu3 %v2703_v60  ;;  %1379 = vmatpush.bf16.msra.mxu0 %v2955_v61  ;;  %v2563_v60 = vor.u32 %v3481_v48, %v2562_v47  ;;  %v2815_v61 = vor.u32 %v3544_v53, %v2814_v52  ;;  %v3026_v47 = vld [vmem:[#allocation16 + $0x40] sm:$0xf]  ;;  %v3597_v48 = vld [vmem:[#allocation16 + $0x44] sm:$0xf0]  ;;  %v3099_v52 = vor.u32 %v3615_v43, %v3098_v42 }
 0x1e1   :  { %1394 = vmatpush.bf16.msra.mxu1 %v2707_v0  ;;  %1407 = vmatpush.bf16.msra.mxu2 %v2959_v1  ;;  %v2786_v0 = vld [vmem:[#allocation14 + $0x1d0] sm:$0xf]  ;;  %v3537_v1 = vld [vmem:[#allocation14 + $0x1e8] sm:$0xf0]  ;;  %v3027_v59 = vor.u32 %v3597_v48, %v3026_v47  ;;  %v3058_v43 = vld [vmem:[#allocation16 + $0x80] sm:$0xf] }
 0x1e2   :  { %v3226_v48 = vld [vmem:[#allocation16 + $0x1d0] sm:$0xf] }
 0x1e4   :  { %1367 = vmatpush.bf16.msrb.mxu3 %v2675_v8  ;;  %1380 = vmatpush.bf16.msra.mxu0 %v2927_v9  ;;  %v3524_v8 = vld [vmem:[#allocation14 + $0x180] sm:$0xf0]  ;;  %v2787_v9 = vor.u32 %v3537_v1, %v2786_v0  ;;  %v3091_v0 = vor.u32 %v3613_v56, %v3090_v55  ;;  %v2627_v1 = vor.u32 %v3496_v58, %v2626_v57  ;;  %v3643_v55 = vld [vmem:[#allocation16 + $0x1b4] sm:$0xf0]  ;;  %v3298_v56 = vld [vmem:[#allocation16 + $0x260] sm:$0xf] }
 0x1e5   :  { %1395 = vmatpush.bf16.msra.mxu1 %v2679_v12  ;;  %1408 = vmatpush.bf16.msra.mxu2 %v2931_v13  ;;  %v2739_v12 = vor.u32 %v3524_v8, %v2738_v7  ;;  %v2962_v13 = vld [vmem:[#allocation14 + $0x328] sm:$0xf]  ;;  %v3010_v8 = vld [vmem:[#allocation16 + $0x20] sm:$0xf] }
 0x1e6   :  { %v3665_v58 = vld [vmem:[#allocation16 + $0x264] sm:$0xf0] }
 0x1e7   :  { %1316 = vmatmul.bf16.vlgmr.msra.gmra.mxu3 %v4101_v37  ;;  %1344 = vmatmul.bf16.vlgmr.msrb.gmra.mxu1 %v4101_v37 }
 0x1e8   :  { %1368 = vmatpush.bf16.msrb.mxu3 %v2647_v20  ;;  %1381 = vmatpush.bf16.msra.mxu0 %v2899_v21  ;;  %v2963_v20 = vor.u32 %v3580_v14, %v2962_v13  ;;  %v3051_v21 = vor.u32 %v3603_v18, %v3050_v17  ;;  %v2599_v13 = vor.u32 %v3489_v6, %v2598_v5  ;;  %v3545_v14 = vld [vmem:[#allocation14 + $0x228] sm:$0xf0]  ;;  %v2570_v17 = vld [vmem:[#allocation14 + $0x18] sm:$0xf]  ;;  %v3482_v18 = vld [vmem:[#allocation14 + $0x30] sm:$0xf0] }
 0x1e9   :  { %1396 = vmatpush.bf16.msra.mxu1 %v2651_v24  ;;  %1409 = vmatpush.bf16.msra.mxu2 %v2903_v25  ;;  %v3619_v24 = vld [vmem:[#allocation16 + $0xf4] sm:$0xf0]  ;;  %v2711_v25 = vor.u32 %v3517_v16, %v2710_v15  ;;  %v3074_v15 = vld [vmem:[#allocation16 + $0xa0] sm:$0xf]  ;;  %v3609_v16 = vld [vmem:[#allocation16 + $0xa4] sm:$0xf0] }
 0x1ea   :  { %v3115_v28 = vor.u32 %v3619_v24, %v3114_v23  ;;  %v3075_v23 = vor.u32 %v3609_v16, %v3074_v15  ;;  %v2571_v24 = vor.u32 %v3482_v18, %v2570_v17  ;;  %v3354_v15 = vld [vmem:[#allocation16 + $0x2d0] sm:$0xf]  ;;  %v3679_v17 = vld [vmem:[#allocation16 + $0x2d4] sm:$0xf0]  ;;  %v3170_v18 = vld [vmem:[#allocation16 + $0x160] sm:$0xf] }
 0x1eb   :  { %1330 = vmatmul.bf16.vlgmr.msrb.gmra.mxu0 %v4105_v51  ;;  %1358 = vmatmul.bf16.vlgmr.msrb.gmra.mxu2 %v4105_v51 }
 0x1ec   :  { %1369 = vmatpush.bf16.msrb.mxu3 %v2619_v32  ;;  %1382 = vmatpush.bf16.msra.mxu0 %v2871_v33  ;;  %v3043_v32 = vor.u32 %v3601_v22, %v3042_v19  ;;  %v3617_v33 = vld [vmem:[#allocation16 + $0xe4] sm:$0xf0] }
 0x1ed   :  { %1397 = vmatpush.bf16.msra.mxu1 %v2623_v36  ;;  %1410 = vmatpush.bf16.msra.mxu2 %v2875_v38  ;;  %v2935_v36 = vor.u32 %v3573_v27, %v2934_v26  ;;  %v2906_v38 = vld [vmem:[#allocation14 + $0x2b8] sm:$0xf]  ;;  %v3107_v39 = vor.u32 %v3617_v33, %v3106_v29  ;;  %v3538_v26 = vld [vmem:[#allocation14 + $0x1f0] sm:$0xf0]  ;;  %v3242_v27 = vld [vmem:[#allocation16 + $0x1f0] sm:$0xf] }
 0x1ee   :  { %v3589_v33 = vld [vmem:[#allocation16 + $0x4] sm:$0xf0] }
 0x1f0   :  { %1370 = vmatpush.bf16.msrb.mxu3 %v2591_v45  ;;  %1383 = vmatpush.bf16.msra.mxu0 %v2843_v46  ;;  %v3503_v45 = vld [vmem:[#allocation14 + $0xd8] sm:$0xf0]  ;;  %v3035_v46 = vor.u32 %v3599_v35, %v3034_v34  ;;  %v3306_v35 = vld [vmem:[#allocation16 + $0x270] sm:$0xf] }
 0x1f1   :  { %1398 = vmatpush.bf16.msra.mxu1 %v2595_v49  ;;  %1411 = vmatpush.bf16.msra.mxu2 %v2847_v50  ;;  %v2907_v49 = vor.u32 %v3566_v41, %v2906_v38  ;;  %v2878_v50 = vld [vmem:[#allocation14 + $0x280] sm:$0xf]  ;;  %v2655_v53 = vor.u32 %v3503_v45, %v2654_v44  ;;  %v3649_v41 = vld [vmem:[#allocation16 + $0x1e4] sm:$0xf0] }
 0x1f2   :  { %v3605_v44 = vld [vmem:[#allocation16 + $0x84] sm:$0xf0] }
 0x1f3   :  { %v3059_v47 = vor.u32 %v3605_v44, %v3058_v43  ;;  %v3600_v43 = vld [vmem:[#allocation16 + $0x64] sm:$0xf] }
 0x1f4   :  { %1371 = vmatpush.bf16.msrb.mxu3 %v2563_v60  ;;  %1384 = vmatpush.bf16.msra.mxu0 %v2815_v61  ;;  %v3018_v60 = vld [vmem:[#allocation16 + $0x30] sm:$0xf]  ;;  %v3595_v61 = vld [vmem:[#allocation16 + $0x34] sm:$0xf0] }
 0x1f5   :  { %1399 = vmatpush.bf16.msra.mxu1 %v2567_v62  ;;  %1412 = vmatpush.bf16.msra.mxu2 %v2819_v63  ;;  %v2879_v62 = vor.u32 %v3559_v54, %v2878_v50  ;;  %v2850_v63 = vld [vmem:[#allocation14 + $0x248] sm:$0xf]  ;;  %v3019_v7 = vor.u32 %v3595_v61, %v3018_v60  ;;  %v3683_v60 = vld [vmem:[#allocation16 + $0x2f4] sm:$0xf0]  ;;  %v3299_v61 = vor.u32 %v3665_v58, %v3298_v56  ;;  %v3036_v56 = vld [vmem:[#allocation16 + $0x58] sm:$0xf0] }
 0x1f7   :  { %1372 = vmatmul.bf16.vlgmr.msrb.gmra.mxu3 %v4101_v37 }
 0x1f8   :  { %1420 = vmatpush.bf16.msra.mxu3 %v2767_v3  ;;  %1385 = vmatpush.bf16.msra.mxu0 %v2787_v9  ;;  %v3082_v3 = vld [vmem:[#allocation16 + $0xb0] sm:$0xf]  ;;  %v3593_v9 = vld [vmem:[#allocation16 + $0x24] sm:$0xf0] }
 0x1f9   :  { %1400 = vmatmul.bf16.vlgmr.msra.gmra.mxu1 %v4101_v37  ;;  %1413 = vmatpush.bf16.msra.mxu2 %v2791_v10  ;;  %v2851_v10 = vor.u32 %v3552_v2, %v2850_v63  ;;  %v3011_v19 = vor.u32 %v3593_v9, %v3010_v8  ;;  %v3641_v63 = vld [vmem:[#allocation16 + $0x1a4] sm:$0xf0]  ;;  %v3663_v2 = vld [vmem:[#allocation16 + $0x254] sm:$0xf0] }
 0x1fa   :  { %2169 = vmatpush.bf16.msrb.mxu1 %v3051_v21  ;;  %v3591_v21 = vld [vmem:[#allocation16 + $0x14] sm:$0xf0] }
 0x1fb   :  { %1386 = vmatmul.bf16.vlgmr.msra.gmra.mxu0 %v4105_v51  ;;  %v3635_v8 = vld [vmem:[#allocation16 + $0x174] sm:$0xf0] }
 0x1fc   :  { %1434 = vmatpush.bf16.msrb.mxu0 %v2991_v11  ;;  %1421 = vmatpush.bf16.msra.mxu3 %v2739_v12  ;;  %v2822_v11 = vld [vmem:[#allocation14 + $0x210] sm:$0xf]  ;;  %v3083_v12 = vor.u32 %v3611_v4, %v3082_v3  ;;  %v3362_v3 = vld [vmem:[#allocation16 + $0x2e0] sm:$0xf]  ;;  %v3681_v4 = vld [vmem:[#allocation16 + $0x2e4] sm:$0xf0] }
 0x1fd   :  { %1414 = vmatmul.bf16.vlgmr.msra.gmra.mxu2 %v4105_v51  ;;  %v2823_v22 = vor.u32 %v3545_v14, %v2822_v11  ;;  %v3363_v6 = vor.u32 %v3681_v4, %v3362_v3  ;;  %v3639_v11 = vld [vmem:[#allocation16 + $0x194] sm:$0xf0]  ;;  %v3661_v14 = vld [vmem:[#allocation16 + $0x244] sm:$0xf0]  ;;  %v3028_v4 = vld [vmem:[#allocation16 + $0x48] sm:$0xf0] }
 0x1fe   :  { %2183 = vmatpush.bf16.msrb.mxu2 %v3115_v28  ;;  %2170 = vmatpush.bf16.msrb.mxu1 %v3043_v32  ;;  %v3651_v28 = vld [vmem:[#allocation16 + $0x1f4] sm:$0xf0]  ;;  %v2994_v32 = vld [vmem:[#allocation16] sm:$0xf] }
 0x1ff   :  { %v3243_v38 = vor.u32 %v3651_v28, %v3242_v27  ;;  %v2995_v42 = vor.u32 %v3589_v33, %v2994_v32  ;;  %v3346_v27 = vld [vmem:[#allocation16 + $0x2c0] sm:$0xf]  ;;  %v3677_v28 = vld [vmem:[#allocation16 + $0x2c4] sm:$0xf0]  ;;  %v3052_v32 = vld [vmem:[#allocation16 + $0x78] sm:$0xf0] }
 0x200   :  { %1435 = vmatpush.bf16.msrb.mxu0 %v2963_v20  ;;  %1422 = vmatpush.bf16.msra.mxu3 %v2711_v25  ;;  %v3002_v20 = vld [vmem:[#allocation16 + $0x10] sm:$0xf]  ;;  %v2794_v25 = vld [vmem:[#allocation14 + $0x1d8] sm:$0xf] }
 0x201   :  { %v3003_v29 = vor.u32 %v3591_v21, %v3002_v20  ;;  %v2795_v34 = vor.u32 %v3538_v26, %v2794_v25  ;;  %v3355_v20 = vor.u32 %v3679_v17, %v3354_v15  ;;  %v3659_v26 = vld [vmem:[#allocation16 + $0x234] sm:$0xf0]  ;;  %v3162_v33 = vld [vmem:[#allocation16 + $0x150] sm:$0xf] }
 0x202   :  { %2184 = vmatpush.bf16.msrb.mxu2 %v3107_v39  ;;  %2171 = vmatpush.bf16.msrb.mxu1 %v3035_v46  ;;  %v3234_v39 = vld [vmem:[#allocation16 + $0x1e0] sm:$0xf]  ;;  %v3130_v15 = vld [vmem:[#allocation16 + $0x110] sm:$0xf] }
 0x203   :  { %v3235_v46 = vor.u32 %v3649_v41, %v3234_v39  ;;  %v3657_v39 = vld [vmem:[#allocation16 + $0x224] sm:$0xf0]  ;;  %v3338_v41 = vld [vmem:[#allocation16 + $0x2b0] sm:$0xf] }
 0x204   :  { %1436 = vmatpush.bf16.msrb.mxu0 %v2935_v36  ;;  %1423 = vmatpush.bf16.msra.mxu3 %v2683_v40  ;;  %v3667_v36 = vld [vmem:[#allocation16 + $0x274] sm:$0xf0]  ;;  %v3067_v40 = vor.u32 %v3607_v31, %v3066_v30  ;;  %v3347_v30 = vor.u32 %v3677_v28, %v3346_v27  ;;  %v3602_v31 = vld [vmem:[#allocation16 + $0x74] sm:$0xf] }
 0x205   :  { %v3307_v45 = vor.u32 %v3667_v36, %v3306_v35  ;;  %v3631_v35 = vld [vmem:[#allocation16 + $0x154] sm:$0xf0]  ;;  %v3590_v28 = vld [vmem:[#allocation16 + $0x14] sm:$0xf] }
 0x206   :  { %2185 = vmatpush.bf16.msrb.mxu2 %v3099_v52  ;;  %2172 = vmatpush.bf16.msrb.mxu1 %v3027_v59  ;;  %v3218_v52 = vld [vmem:[#allocation16 + $0x1c0] sm:$0xf]  ;;  %v3370_v59 = vld [vmem:[#allocation16 + $0x2f0] sm:$0xf]  ;;  %v3163_v36 = vor.u32 %v3631_v35, %v3162_v33  ;;  %v3699_v27 = vld [vmem:[#allocation16 + $0x374] sm:$0xf0] }
 0x207   :  { %v3426_v33 = vld [vmem:[#allocation16 + $0x360] sm:$0xf]  ;;  %v3588_v35 = vld [vmem:[#allocation16 + $0x4] sm:$0xf] }
 0x208   :  { %1437 = vmatpush.bf16.msrb.mxu0 %v2907_v49  ;;  %1424 = vmatpush.bf16.msra.mxu3 %v2655_v53  ;;  %v3647_v49 = vld [vmem:[#allocation16 + $0x1d4] sm:$0xf0]  ;;  %v3645_v53 = vld [vmem:[#allocation16 + $0x1c4] sm:$0xf0] }
 0x209   :  { %v3227_v50 = vor.u32 %v3647_v49, %v3226_v48  ;;  %v3219_v54 = vor.u32 %v3645_v53, %v3218_v52  ;;  %v3655_v52 = vld [vmem:[#allocation16 + $0x214] sm:$0xf0]  ;;  %v3330_v53 = vld [vmem:[#allocation16 + $0x2a0] sm:$0xf] }
 0x20a   :  { %2186 = vmatpush.bf16.msrb.mxu2 %v3091_v0  ;;  %2173 = vmatpush.bf16.msrb.mxu1 %v3019_v7  ;;  %v3290_v0 = vld [vmem:[#allocation16 + $0x250] sm:$0xf] }
 0x20b   :  { %v3291_v5 = vor.u32 %v3663_v2, %v3290_v0  ;;  %v3178_v7 = vld [vmem:[#allocation16 + $0x170] sm:$0xf]  ;;  %v3596_v2 = vld [vmem:[#allocation16 + $0x44] sm:$0xf] }
 0x20c   :  { %1438 = vmatpush.bf16.msrb.mxu0 %v2879_v62  ;;  %1425 = vmatpush.bf16.msra.mxu3 %v2627_v1  ;;  %v3371_v62 = vor.u32 %v3683_v60, %v3370_v59  ;;  %v3179_v9 = vor.u32 %v3635_v8, %v3178_v7  ;;  %v3146_v59 = vld [vmem:[#allocation16 + $0x130] sm:$0xf]  ;;  %v3627_v60 = vld [vmem:[#allocation16 + $0x134] sm:$0xf0]  ;;  %v3625_v7 = vld [vmem:[#allocation16 + $0x124] sm:$0xf0] }
 0x20d   :  { %v3322_v0 = vld [vmem:[#allocation16 + $0x290] sm:$0xf] }
 0x20e   :  { %2187 = vmatpush.bf16.msrb.mxu2 %v3083_v12  ;;  %2174 = vmatpush.bf16.msrb.mxu1 %v3011_v19  ;;  %v3633_v19 = vld [vmem:[#allocation16 + $0x164] sm:$0xf0] }
 0x20f   :  { %v3171_v21 = vor.u32 %v3633_v19, %v3170_v18  ;;  %v3592_v18 = vld [vmem:[#allocation16 + $0x24] sm:$0xf]  ;;  %v3012_v19 = vld [vmem:[#allocation16 + $0x28] sm:$0xf0] }
 0x210   :  { %1439 = vmatpush.bf16.msrb.mxu0 %v2851_v10  ;;  %1426 = vmatpush.bf16.msra.mxu3 %v2599_v13  ;;  %v3194_v10 = vld [vmem:[#allocation16 + $0x190] sm:$0xf]  ;;  %v3282_v13 = vld [vmem:[#allocation16 + $0x240] sm:$0xf] }
 0x211   :  { %v3195_v12 = vor.u32 %v3639_v11, %v3194_v10  ;;  %v3283_v16 = vor.u32 %v3661_v14, %v3282_v13  ;;  %v3669_v10 = vld [vmem:[#allocation16 + $0x284] sm:$0xf0]  ;;  %v3020_v13 = vld [vmem:[#allocation16 + $0x38] sm:$0xf0] }
 0x212   :  { %2188 = vmatpush.bf16.msrb.mxu2 %v3075_v23  ;;  %2175 = vmatpush.bf16.msrb.mxu1 %v3003_v29  ;;  %v3637_v23 = vld [vmem:[#allocation16 + $0x184] sm:$0xf0] }
 0x214   :  { %1440 = vmatpush.bf16.msrb.mxu0 %v2823_v22  ;;  %1427 = vmatpush.bf16.msra.mxu3 %v2571_v24  ;;  %v3186_v22 = vld [vmem:[#allocation16 + $0x180] sm:$0xf]  ;;  %v3274_v24 = vld [vmem:[#allocation16 + $0x230] sm:$0xf] }
 0x215   :  { %v3187_v25 = vor.u32 %v3637_v23, %v3186_v22  ;;  %v3275_v29 = vor.u32 %v3659_v26, %v3274_v24  ;;  %v3122_v22 = vld [vmem:[#allocation16 + $0x100] sm:$0xf]  ;;  %v3621_v23 = vld [vmem:[#allocation16 + $0x104] sm:$0xf0]  ;;  %v3434_v26 = vld [vmem:[#allocation16 + $0x370] sm:$0xf] }
 0x216   :  { %2189 = vmatpush.bf16.msrb.mxu2 %v3067_v40  ;;  %2176 = vmatpush.bf16.msrb.mxu1 %v2995_v42  ;;  %v3675_v42 = vld [vmem:[#allocation16 + $0x2b4] sm:$0xf0]  ;;  %v3123_v24 = vor.u32 %v3621_v23, %v3122_v22  ;;  %v3689_v22 = vld [vmem:[#allocation16 + $0x324] sm:$0xf0] }
 0x217   :  { %1428 = vmatmul.bf16.vlgmr.msra.gmra.mxu3 %v4101_v37  ;;  %v3210_v37 = vld [vmem:[#allocation16 + $0x1b0] sm:$0xf]  ;;  %v3339_v44 = vor.u32 %v3675_v42, %v3338_v41  ;;  %v1449_v23 = vld [vmem:[#allocation7 + $0x8] sm:$0xff] }
 0x218   :  { %1441 = vmatpush.bf16.msrb.mxu0 %v2795_v34  ;;  %v3211_v57 = vor.u32 %v3643_v55, %v3210_v37  ;;  %2197 = vmatpush.bf16.msrb.mxu3 %v3179_v9  ;;  %v3055_v34 = vor.u32 %v3602_v31, %v3052_v32  ;;  %v3673_v37 = vld [vmem:[#allocation16 + $0x2a4] sm:$0xf0]  ;;  %v3598_v55 = vld [vmem:[#allocation16 + $0x54] sm:$0xf]  ;;  %v3314_v9 = vld [vmem:[#allocation16 + $0x280] sm:$0xf] }
 0x219   :  { %v3039_v58 = vor.u32 %v3598_v55, %v3036_v56  ;;  %v3315_v11 = vor.u32 %v3669_v10, %v3314_v9  ;;  %v1452_v41 = vld [vmem:[#allocation7 + $0x1c] sm:$0xff] }
 0x21a   :  { %2225 = vmatpush.bf16.msra.mxu1 %v3307_v45  ;;  %2190 = vmatpush.bf16.msrb.mxu2 %v3059_v47  ;;  %v3044_v45 = vld [vmem:[#allocation16 + $0x68] sm:$0xf0]  ;;  %v3629_v47 = vld [vmem:[#allocation16 + $0x144] sm:$0xf0]  ;;  %v1464_v56 = vunpack.c.h.bf16 %v1452_v41 }
 0x21b   :  { %1442 = vmatmul.bf16.vlgmr.msrb.gmra.mxu0 %v4105_v51  ;;  %v3202_v51 = vld [vmem:[#allocation16 + $0x1a0] sm:$0xf]  ;;  %v3047_v48 = vor.u32 %v3600_v43, %v3044_v45  ;;  %v3418_v45 = vld [vmem:[#allocation16 + $0x350] sm:$0xf] }
 0x21c   :  { %2211 = vmatpush.bf16.msra.mxu0 %v3243_v38  ;;  %v3203_v1 = vor.u32 %v3641_v63, %v3202_v51  ;;  %2198 = vmatpush.bf16.msrb.mxu3 %v3171_v21  ;;  %v3266_v38 = vld [vmem:[#allocation16 + $0x220] sm:$0xf]  ;;  %v3653_v51 = vld [vmem:[#allocation16 + $0x204] sm:$0xf0]  ;;  %v3015_v21 = vor.u32 %v3592_v18, %v3012_v19  ;;  %v3100_v18 = vld [vmem:[#allocation16 + $0xd8] sm:$0xf0] }
 0x21d   :  { %v3267_v40 = vor.u32 %v3657_v39, %v3266_v38  ;;  %v2996_v38 = vld [vmem:[#allocation16 + $0x8] sm:$0xf0]  ;;  %v3632_v19 = vld [vmem:[#allocation16 + $0x164] sm:$0xf] }
 0x21e   :  { %2226 = vmatpush.bf16.msra.mxu1 %v3299_v61  ;;  %2239 = vmatpush.bf16.msra.mxu2 %v3371_v62  ;;  %v3147_v61 = vor.u32 %v3627_v60, %v3146_v59  ;;  %v3250_v62 = vld [vmem:[#allocation16 + $0x200] sm:$0xf]  ;;  %v1448_v39 = vld [vmem:[#allocation7] sm:$0xff]  ;;  %v2999_v42 = vor.u32 %v3588_v35, %v2996_v38 }
 0x21f   :  { %v3251_v63 = vor.u32 %v3653_v51, %v3250_v62  ;;  %v1457_v55 = vunpack.c.h.bf16 %v1448_v39 }
 0x220   :  { %2212 = vmatpush.bf16.msra.mxu0 %v3235_v46  ;;  %2199 = vmatpush.bf16.msrb.mxu3 %v3163_v36  ;;  %v3154_v46 = vld [vmem:[#allocation16 + $0x140] sm:$0xf] }
 0x221   :  { %v3155_v49 = vor.u32 %v3629_v47, %v3154_v46  ;;  %v3695_v46 = vld [vmem:[#allocation16 + $0x354] sm:$0xf0] }
 0x222   :  { %2227 = vmatpush.bf16.msra.mxu1 %v3291_v5  ;;  %2240 = vmatpush.bf16.msra.mxu2 %v3363_v6  ;;  %v3031_v5 = vor.u32 %v3596_v2, %v3028_v4  ;;  %v3138_v6 = vld [vmem:[#allocation16 + $0x120] sm:$0xf]  ;;  %v3634_v4 = vld [vmem:[#allocation16 + $0x174] sm:$0xf] }
 0x223   :  { %v3139_v8 = vor.u32 %v3625_v7, %v3138_v6  ;;  %v3402_v7 = vld [vmem:[#allocation16 + $0x330] sm:$0xf] }
 0x224   :  { %2213 = vmatpush.bf16.msra.mxu0 %v3227_v50  ;;  %v3258_v50 = vld [vmem:[#allocation16 + $0x210] sm:$0xf]  ;;  %2200 = vmatpush.bf16.msrb.mxu3 %v3155_v49  ;;  %v1463_v49 = vunpack.c.l.bf16 %v1452_v41 }
 0x226   :  { %2228 = vmatpush.bf16.msra.mxu1 %v3283_v16  ;;  %2241 = vmatpush.bf16.msra.mxu2 %v3355_v20  ;;  %v3623_v16 = vld [vmem:[#allocation16 + $0x114] sm:$0xf0] }
 0x227   :  { %v3131_v17 = vor.u32 %v3623_v16, %v3130_v15  ;;  %v3614_v16 = vld [vmem:[#allocation16 + $0xd4] sm:$0xf] }
 0x228   :  { %2214 = vmatpush.bf16.msra.mxu0 %v3219_v54  ;;  %v3259_v54 = vor.u32 %v3655_v52, %v3258_v50  ;;  %2201 = vmatpush.bf16.msrb.mxu3 %v3147_v61  ;;  %v3419_v50 = vor.u32 %v3695_v46, %v3418_v45 }
 0x22a   :  { %2229 = vmatpush.bf16.msra.mxu1 %v3275_v29  ;;  %2242 = vmatpush.bf16.msra.mxu2 %v3347_v30  ;;  %v3435_v29 = vor.u32 %v3699_v27, %v3434_v26  ;;  %v3004_v30 = vld [vmem:[#allocation16 + $0x18] sm:$0xf0]  ;;  %v3103_v27 = vor.u32 %v3614_v16, %v3100_v18  ;;  %v3664_v16 = vld [vmem:[#allocation16 + $0x264] sm:$0xf] }
 0x22b   :  { %v3007_v32 = vor.u32 %v3590_v28, %v3004_v30  ;;  %v3092_v30 = vld [vmem:[#allocation16 + $0xc8] sm:$0xf0] }
 0x22c   :  { %2215 = vmatpush.bf16.msra.mxu0 %v3211_v57  ;;  %v3331_v57 = vor.u32 %v3673_v37, %v3330_v53  ;;  %2202 = vmatpush.bf16.msrb.mxu3 %v3139_v8  ;;  %v3116_v37 = vld [vmem:[#allocation16 + $0xf8] sm:$0xf0]  ;;  %v3691_v8 = vld [vmem:[#allocation16 + $0x334] sm:$0xf0] }
 0x22e   :  { %2230 = vmatpush.bf16.msra.mxu1 %v3267_v40  ;;  %2243 = vmatpush.bf16.msra.mxu2 %v3339_v44 }
 0x230   :  { %2216 = vmatpush.bf16.msra.mxu0 %v3203_v1  ;;  %v3671_v1 = vld [vmem:[#allocation16 + $0x294] sm:$0xf0]  ;;  %2203 = vmatpush.bf16.msrb.mxu3 %v3131_v17 }
 0x231   :  { %v3323_v3 = vor.u32 %v3671_v1, %v3322_v0  ;;  %v3616_v0 = vld [vmem:[#allocation16 + $0xe4] sm:$0xf] }
 0x232   :  { %2231 = vmatpush.bf16.msra.mxu1 %v3259_v54  ;;  %2244 = vmatpush.bf16.msra.mxu2 %v3331_v57  ;;  %v3618_v54 = vld [vmem:[#allocation16 + $0xf4] sm:$0xf]  ;;  %v3410_v57 = vld [vmem:[#allocation16 + $0x340] sm:$0xf] }
 0x234   :  { %2217 = vmatpush.bf16.msra.mxu0 %v3195_v12  ;;  %v3594_v12 = vld [vmem:[#allocation16 + $0x34] sm:$0xf]  ;;  %2204 = vmatpush.bf16.msrb.mxu3 %v3123_v24 }
 0x235   :  { %v3023_v14 = vor.u32 %v3594_v12, %v3020_v13  ;;  %v3403_v12 = vor.u32 %v3691_v8, %v3402_v7  ;;  %v1453_v24 = vld [vmem:[#allocation7 + $0x24] sm:$0xff]  ;;  %v3148_v8 = vld [vmem:[#allocation16 + $0x138] sm:$0xf0] }
 0x236   :  { %2232 = vmatpush.bf16.msra.mxu1 %v3251_v63  ;;  %2245 = vmatpush.bf16.msra.mxu2 %v3323_v3  ;;  %v3119_v63 = vor.u32 %v3618_v54, %v3116_v37  ;;  %v3108_v3 = vld [vmem:[#allocation16 + $0xe8] sm:$0xf0]  ;;  %v3685_v54 = vld [vmem:[#allocation16 + $0x304] sm:$0xf0]  ;;  %v3626_v7 = vld [vmem:[#allocation16 + $0x134] sm:$0xf] }
 0x238   :  { %2218 = vmatpush.bf16.msra.mxu0 %v3187_v25  ;;  %2253 = vmatpush.bf16.msra.mxu3 %v3435_v29  ;;  %v3612_v29 = vld [vmem:[#allocation16 + $0xc4] sm:$0xf] }
 0x23a   :  { %2246 = vmatpush.bf16.msra.mxu2 %v3315_v11 }
 0x23c   :  { %2267 = vmatpush.bf16.msrb.mxu0 %v3055_v34  ;;  %v3697_v34 = vld [vmem:[#allocation16 + $0x364] sm:$0xf0] }
 0x23d   :  { %v3427_v36 = vor.u32 %v3697_v34, %v3426_v33  ;;  %v3386_v33 = vld [vmem:[#allocation16 + $0x310] sm:$0xf]  ;;  %v3687_v34 = vld [vmem:[#allocation16 + $0x314] sm:$0xf0] }
 0x23f   :  { %2254 = vmatpush.bf16.msra.mxu3 %v3427_v36  ;;  %v3387_v36 = vor.u32 %v3687_v34, %v3386_v33  ;;  %v3662_v33 = vld [vmem:[#allocation16 + $0x254] sm:$0xf] }
 0x240   :  { %2268 = vmatpush.bf16.msrb.mxu0 %v3047_v48  ;;  %v1456_v48 = vunpack.c.l.bf16 %v1448_v39  ;;  %v1458_v39 = vunpack.c.l.bf16 %v1449_v23 }
 0x243   :  { %2255 = vmatpush.bf16.msra.mxu3 %v3419_v50  ;;  %v1459_v50 = vunpack.c.h.bf16 %v1449_v23 }
 0x244   :  { %2269 = vmatpush.bf16.msrb.mxu0 %v3039_v58  ;;  %v3693_v58 = vld [vmem:[#allocation16 + $0x344] sm:$0xf0] }
 0x245   :  { %v3411_v62 = vor.u32 %v3693_v58, %v3410_v57  ;;  %v3650_v58 = vld [vmem:[#allocation16 + $0x1f4] sm:$0xf] }
 0x247   :  { %2256 = vmatpush.bf16.msra.mxu3 %v3411_v62 }
 0x248   :  { %2270 = vmatpush.bf16.msrb.mxu0 %v3031_v5  ;;  %v3180_v5 = vld [vmem:[#allocation16 + $0x178] sm:$0xf0] }
 0x249   :  { %v3183_v15 = vor.u32 %v3634_v4, %v3180_v5  ;;  %v3076_v4 = vld [vmem:[#allocation16 + $0xa8] sm:$0xf0] }
 0x24b   :  { %2257 = vmatpush.bf16.msra.mxu3 %v3403_v12  ;;  %v3236_v12 = vld [vmem:[#allocation16 + $0x1e8] sm:$0xf0] }
 0x24c   :  { %2271 = vmatpush.bf16.msrb.mxu0 %v3023_v14  ;;  %v3111_v14 = vor.u32 %v3616_v0, %v3108_v3  ;;  %v3608_v3 = vld [vmem:[#allocation16 + $0xa4] sm:$0xf] }
 0x250   :  { %2272 = vmatpush.bf16.msrb.mxu0 %v3015_v21  ;;  %v3394_v21 = vld [vmem:[#allocation16 + $0x320] sm:$0xf] }
 0x254   :  { %v1289_v20 = vpop.f32.mrf.mxu1  ;;  %2273 = vmatpush.bf16.msrb.mxu0 %v3007_v32  ;;  %v3164_v32 = vld [vmem:[#allocation16 + $0x158] sm:$0xf0] }
 0x258   :  { %v1275_v25 = vpop.f32.mrf.mxu0  ;;  %2274 = vmatpush.bf16.msrb.mxu0 %v2999_v42  ;;  %v3095_v42 = vor.u32 %v3612_v29, %v3092_v30  ;;  %v4131_v29 = vld [vmem:[#allocation7 + $0x10] sm:$0xff] }
 0x259   :  { %v4133_v30 = vld [vmem:[#allocation7 + $0x2c] sm:$0xff] }
 0x25a   :  { %v1261_v31 = vpop.f32.mrf.mxu3 }
 0x25b   :  { %v1276_v47 = vadd.f32 %v1275_v25, %v1261_v31  ;;  %v3395_v25 = vor.u32 %v3689_v22, %v3394_v21  ;;  %v3630_v31 = vld [vmem:[#allocation16 + $0x154] sm:$0xf]  ;;  %v3068_v22 = vld [vmem:[#allocation16 + $0x98] sm:$0xf0] }
 0x25c   :  { %v1291_v43 = vpop.f32.mrf.mxu1  ;;  %v3606_v21 = vld [vmem:[#allocation16 + $0x94] sm:$0xf] }
 0x25d   :  { %v1470_v59 = vmul.f32 %v1456_v48, %v1276_v47  ;;  %2258 = vmatpush.bf16.msra.mxu3 %v3395_v25  ;;  %v3084_v47 = vld [vmem:[#allocation16 + $0xb8] sm:$0xf0]  ;;  %v3628_v48 = vld [vmem:[#allocation16 + $0x144] sm:$0xf]  ;;  %v3140_v25 = vld [vmem:[#allocation16 + $0x128] sm:$0xf0] }
 0x25e   :  { %v1303_v40 = vpop.f32.mrf.mxu2 }
 0x25f   :  { %v1304_v60 = vadd.f32 %v1303_v40, %v1289_v20  ;;  %v3172_v20 = vld [vmem:[#allocation16 + $0x168] sm:$0xf0]  ;;  %v1465_v40 = vunpack.c.l.bf16 %v1453_v24 }
 0x260   :  { %v1277_v44 = vpop.f32.mrf.mxu0  ;;  %v3175_v28 = vor.u32 %v3632_v19, %v3172_v20  ;;  %v3151_v19 = vor.u32 %v3626_v7, %v3148_v8  ;;  %v3300_v20 = vld [vmem:[#allocation16 + $0x268] sm:$0xf0] }
 0x261   :  { %v1471_v9 = vmul.f32 %v1457_v55, %v1304_v60  ;;  %2259 = vmatpush.bf16.msra.mxu3 %v3387_v36  ;;  %v3292_v36 = vld [vmem:[#allocation16 + $0x258] sm:$0xf0] }
 0x262   :  { %v1263_v52 = vpop.f32.mrf.mxu3 }
 0x263   :  { %v1278_v53 = vadd.f32 %v1277_v44, %v1263_v52  ;;  %v3610_v44 = vld [vmem:[#allocation16 + $0xb4] sm:$0xf]  ;;  %v1466_v52 = vunpack.c.h.bf16 %v1453_v24  ;;  %v3624_v24 = vld [vmem:[#allocation16 + $0x124] sm:$0xf] }
 0x264   :  { %v1345_v10 = vpop.f32.mrf.mxu1 }
 0x265   :  { %v1477_v61 = vmul.f32 %v1463_v49, %v1278_v53  ;;  %v3156_v49 = vld [vmem:[#allocation16 + $0x148] sm:$0xf0]  ;;  %v3378_v53 = vld [vmem:[#allocation16 + $0x300] sm:$0xf] }
 0x266   :  { %v1305_v51 = vpop.f32.mrf.mxu2  ;;  %v3379_v57 = vor.u32 %v3685_v54, %v3378_v53  ;;  %v3159_v62 = vor.u32 %v3628_v48, %v3156_v49  ;;  %v3660_v53 = vld [vmem:[#allocation16 + $0x244] sm:$0xf] }
 0x267   :  { %v4119_v1 = vpack.c.bf16 %v1477_v61, %v1470_v59  ;;  %v1306_v2 = vadd.f32 %v1305_v51, %v1291_v43  ;;  %v3167_v43 = vor.u32 %v3630_v31, %v3164_v32  ;;  %v3244_v59 = vld [vmem:[#allocation16 + $0x1f8] sm:$0xf0]  ;;  %v3087_v61 = vor.u32 %v3610_v44, %v3084_v47  ;;  %v3666_v51 = vld [vmem:[#allocation16 + $0x274] sm:$0xf]  ;;  %v3220_v47 = vld [vmem:[#allocation16 + $0x1c8] sm:$0xf0] }
 0x268   :  { %v1331_v6 = vpop.f32.mrf.mxu0  ;;  %2260 = vmatpush.bf16.msra.mxu3 %v3379_v57  ;;  %v3247_v5 = vor.u32 %v3650_v58, %v3244_v59  ;;  %v3303_v31 = vor.u32 %v3664_v16, %v3300_v20  ;;  %v3071_v32 = vor.u32 %v3606_v21, %v3068_v22  ;;  %v1460_v44 = vunpack.c.l.bf16 %v4131_v29  ;;  %v3372_v57 = vld [vmem:[#allocation16 + $0x2f8] sm:$0xf0]  ;;  %v3620_v59 = vld [vmem:[#allocation16 + $0x104] sm:$0xf]  ;;  %v3364_v16 = vld [vmem:[#allocation16 + $0x2e8] sm:$0xf0] }
 0x269   :  { %v1478_v11 = vmul.f32 %v1464_v56, %v1306_v2  ;;  %2177 = vmatmul.bf16.vlgmr.msrb.gmra.mxu1 %v4119_v1  ;;  %v3308_v2 = vld [vmem:[#allocation16 + $0x278] sm:$0xf0]  ;;  %v3640_v21 = vld [vmem:[#allocation16 + $0x1a4] sm:$0xf]  ;;  %v3204_v22 = vld [vmem:[#allocation16 + $0x1a8] sm:$0xf0] }
 0x26a   :  { %v1317_v13 = vpop.f32.mrf.mxu3  ;;  %2281 = vmatpush.bf16.msrb.mxu1 %v3119_v63  ;;  %v3436_v20 = vld [vmem:[#allocation16 + $0x378] sm:$0xf0] }
 0x26b   :  { %v4122_v17 = vpack.c.bf16 %v1478_v11, %v1471_v9  ;;  %v1332_v38 = vadd.f32 %v1331_v6, %v1317_v13  ;;  %v3648_v11 = vld [vmem:[#allocation16 + $0x1e4] sm:$0xf] }
 0x26c   :  { %v1347_v45 = vpop.f32.mrf.mxu1  ;;  %v3239_v23 = vor.u32 %v3648_v11, %v3236_v12  ;;  %v3658_v11 = vld [vmem:[#allocation16 + $0x234] sm:$0xf]  ;;  %v3276_v12 = vld [vmem:[#allocation16 + $0x238] sm:$0xf0] }
 0x26d   :  { %2191 = vmatmul.bf16.vlgmr.msrb.gmra.mxu2 %v4122_v17  ;;  %v1472_v37 = vmul.f32 %v1458_v39, %v1332_v38  ;;  %v3604_v38 = vld [vmem:[#allocation16 + $0x84] sm:$0xf]  ;;  %v3060_v39 = vld [vmem:[#allocation16 + $0x88] sm:$0xf0] }
 0x26e   :  { %v1359_v26 = vpop.f32.mrf.mxu2  ;;  %2282 = vmatpush.bf16.msrb.mxu1 %v3111_v14  ;;  %2295 = vmatpush.bf16.msrb.mxu2 %v3183_v15  ;;  %v3311_v14 = vor.u32 %v3666_v51, %v3308_v2  ;;  %v3079_v15 = vor.u32 %v3608_v3, %v3076_v4  ;;  %v3212_v2 = vld [vmem:[#allocation16 + $0x1b8] sm:$0xf0]  ;;  %v1468_v4 = vunpack.c.h.bf16 %v4133_v30 }
 0x26f   :  { %v1360_v55 = vadd.f32 %v1359_v26, %v1345_v10 }
 0x270   :  { %v1333_v35 = vpop.f32.mrf.mxu0 }
 0x271   :  { %v1473_v9 = vmul.f32 %v1459_v50, %v1360_v55  ;;  %v3295_v50 = vor.u32 %v3662_v33, %v3292_v36  ;;  %v3284_v55 = vld [vmem:[#allocation16 + $0x248] sm:$0xf0]  ;;  %v3696_v33 = vld [vmem:[#allocation16 + $0x364] sm:$0xf]  ;;  %v3638_v36 = vld [vmem:[#allocation16 + $0x194] sm:$0xf] }
 0x272   :  { %v1319_v41 = vpop.f32.mrf.mxu3  ;;  %2283 = vmatpush.bf16.msrb.mxu1 %v3103_v27  ;;  %2296 = vmatpush.bf16.msrb.mxu2 %v3175_v28  ;;  %v3646_v27 = vld [vmem:[#allocation16 + $0x1d4] sm:$0xf]  ;;  %v3228_v28 = vld [vmem:[#allocation16 + $0x1d8] sm:$0xf0] }
 0x273   :  { %v1334_v46 = vadd.f32 %v1333_v35, %v1319_v41  ;;  %v3143_v35 = vor.u32 %v3624_v24, %v3140_v25  ;;  %v3622_v41 = vld [vmem:[#allocation16 + $0x114] sm:$0xf]  ;;  %v3279_v25 = vor.u32 %v3658_v11, %v3276_v12  ;;  %v3324_v12 = vld [vmem:[#allocation16 + $0x298] sm:$0xf0] }
 0x274   :  { %v3670_v11 = vld [vmem:[#allocation16 + $0x294] sm:$0xf] }
 0x275   :  { %v1479_v56 = vmul.f32 %v1465_v40, %v1334_v46  ;;  %v3231_v40 = vor.u32 %v3646_v27, %v3228_v28  ;;  %v3644_v46 = vld [vmem:[#allocation16 + $0x1c4] sm:$0xf] }
 0x276   :  { %v1361_v60 = vpop.f32.mrf.mxu2  ;;  %2284 = vmatpush.bf16.msrb.mxu1 %v3095_v42  ;;  %2297 = vmatpush.bf16.msrb.mxu2 %v3167_v43  ;;  %v1401_v26 = vpop.f32.mrf.mxu1  ;;  %v3132_v42 = vld [vmem:[#allocation16 + $0x118] sm:$0xf0]  ;;  %v3223_v58 = vor.u32 %v3644_v46, %v3220_v47  ;;  %v3656_v28 = vld [vmem:[#allocation16 + $0x224] sm:$0xf]  ;;  %v3694_v46 = vld [vmem:[#allocation16 + $0x354] sm:$0xf] }
 0x277   :  { %v4125_v63 = vpack.c.bf16 %v1479_v56, %v1472_v37  ;;  %v1362_v0 = vadd.f32 %v1361_v60, %v1347_v45  ;;  %v1467_v45 = vunpack.c.l.bf16 %v4133_v30  ;;  %v3135_v37 = vor.u32 %v3622_v41, %v3132_v42  ;;  %v3682_v56 = vld [vmem:[#allocation16 + $0x2f4] sm:$0xf]  ;;  %v3124_v60 = vld [vmem:[#allocation16 + $0x108] sm:$0xf0]  ;;  %v3420_v47 = vld [vmem:[#allocation16 + $0x358] sm:$0xf0] }
 0x278   :  { %v1387_v6 = vpop.f32.mrf.mxu0  ;;  %v3678_v30 = vld [vmem:[#allocation16 + $0x2d4] sm:$0xf] }
 0x279   :  { %v1480_v10 = vmul.f32 %v1466_v52, %v1362_v0  ;;  %2205 = vmatmul.bf16.vlgmr.msrb.gmra.mxu3 %v4125_v63  ;;  %v3063_v52 = vor.u32 %v3604_v38, %v3060_v39  ;;  %v3642_v0 = vld [vmem:[#allocation16 + $0x1b4] sm:$0xf]  ;;  %v3196_v38 = vld [vmem:[#allocation16 + $0x198] sm:$0xf0] }
 0x27a   :  { %v1373_v13 = vpop.f32.mrf.mxu3  ;;  %2285 = vmatpush.bf16.msrb.mxu1 %v3087_v61  ;;  %2298 = vmatpush.bf16.msrb.mxu2 %v3159_v62  ;;  %v1461_v62 = vunpack.c.h.bf16 %v4131_v29  ;;  %v3268_v29 = vld [vmem:[#allocation16 + $0x228] sm:$0xf0]  ;;  %v3654_v42 = vld [vmem:[#allocation16 + $0x214] sm:$0xf] }
 0x27b   :  { %v4128_v18 = vpack.c.bf16 %v1480_v10, %v1473_v9  ;;  %2309 = vmatpush.bf16.msrb.mxu3 %v3247_v5  ;;  %v1388_v43 = vadd.f32 %v1387_v6, %v1373_v13  ;;  %v3287_v5 = vor.u32 %v3660_v53, %v3284_v55  ;;  %v3375_v6 = vor.u32 %v3682_v56, %v3372_v57  ;;  %v3680_v13 = vld [vmem:[#allocation16 + $0x2e4] sm:$0xf]  ;;  %v3674_v55 = vld [vmem:[#allocation16 + $0x2b4] sm:$0xf]  ;;  %v3340_v56 = vld [vmem:[#allocation16 + $0x2b8] sm:$0xf0] }
 0x27c   :  { %v3127_v10 = vor.u32 %v3620_v59, %v3124_v60  ;;  %v3271_v39 = vor.u32 %v3656_v28, %v3268_v29  ;;  %v3423_v53 = vor.u32 %v3694_v46, %v3420_v47  ;;  %v3692_v57 = vld [vmem:[#allocation16 + $0x344] sm:$0xf] }
 0x27d   :  { %2219 = vmatmul.bf16.vlgmr.msra.gmra.mxu0 %v4128_v18  ;;  %v1474_v61 = vmul.f32 %v1460_v44, %v1388_v43  ;;  %v3260_v43 = vld [vmem:[#allocation16 + $0x218] sm:$0xf0]  ;;  %v3676_v44 = vld [vmem:[#allocation16 + $0x2c4] sm:$0xf] }
 0x27e   :  { %2323 = vmatpush.bf16.msra.mxu0 %v3311_v14  ;;  %2286 = vmatpush.bf16.msrb.mxu1 %v3079_v15  ;;  %v1403_v7 = vpop.f32.mrf.mxu1  ;;  %v3215_v14 = vor.u32 %v3642_v0, %v3212_v2  ;;  %v3672_v0 = vld [vmem:[#allocation16 + $0x2a4] sm:$0xf] }
 0x27f   :  { %2299 = vmatpush.bf16.msrb.mxu2 %v3151_v19  ;;  %2310 = vmatpush.bf16.msrb.mxu3 %v3239_v23  ;;  %v3698_v19 = vld [vmem:[#allocation16 + $0x374] sm:$0xf] }
 0x280   :  { %v1415_v34 = vpop.f32.mrf.mxu2  ;;  %v1389_v48 = vpop.f32.mrf.mxu0  ;;  %v3439_v27 = vor.u32 %v3698_v19, %v3436_v20 }
 0x281   :  { %v1416_v3 = vadd.f32 %v1415_v34, %v1401_v26  ;;  %v3367_v26 = vor.u32 %v3680_v13, %v3364_v16  ;;  %v3428_v34 = vld [vmem:[#allocation16 + $0x368] sm:$0xf0]  ;;  %v3688_v13 = vld [vmem:[#allocation16 + $0x324] sm:$0xf] }
 0x282   :  { %v1375_v49 = vpop.f32.mrf.mxu3  ;;  %2324 = vmatpush.bf16.msra.mxu0 %v3303_v31  ;;  %2287 = vmatpush.bf16.msrb.mxu1 %v3071_v32  ;;  %v3356_v32 = vld [vmem:[#allocation16 + $0x2d8] sm:$0xf0]  ;;  %v3431_v41 = vor.u32 %v3696_v33, %v3428_v34  ;;  %v3380_v33 = vld [vmem:[#allocation16 + $0x308] sm:$0xf0] }
 0x283   :  { %v1390_v54 = vadd.f32 %v1389_v48, %v1375_v49  ;;  %2300 = vmatpush.bf16.msrb.mxu2 %v3143_v35  ;;  %2311 = vmatpush.bf16.msrb.mxu3 %v3231_v40  ;;  %v1475_v23 = vmul.f32 %v1461_v62, %v1416_v3  ;;  %v3207_v35 = vor.u32 %v3640_v21, %v3204_v22  ;;  %v3636_v49 = vld [vmem:[#allocation16 + $0x184] sm:$0xf]  ;;  %v3332_v3 = vld [vmem:[#allocation16 + $0x2a8] sm:$0xf0] }
 0x284   :  { %v3359_v40 = vor.u32 %v3678_v30, %v3356_v32  ;;  %v3199_v48 = vor.u32 %v3638_v36, %v3196_v38  ;;  %v3343_v62 = vor.u32 %v3674_v55, %v3340_v56  ;;  %v3684_v32 = vld [vmem:[#allocation16 + $0x304] sm:$0xf] }
 0x285   :  { %v1481_v51 = vmul.f32 %v1467_v45, %v1390_v54  ;;  %v3348_v45 = vld [vmem:[#allocation16 + $0x2c8] sm:$0xf0]  ;;  %v3652_v54 = vld [vmem:[#allocation16 + $0x204] sm:$0xf]  ;;  %v3383_v34 = vor.u32 %v3684_v32, %v3380_v33 }
 0x286   :  { %2325 = vmatpush.bf16.msra.mxu0 %v3295_v50  ;;  %2288 = vmatpush.bf16.msrb.mxu1 %v3063_v52  ;;  %v3263_v50 = vor.u32 %v3654_v42, %v3260_v43  ;;  %v3351_v52 = vor.u32 %v3676_v44, %v3348_v45  ;;  %v1603_v42 = vld [vmem:[%s4167_s10] sm:$0x3]  ;;  %s3982_s10 = smov [#allocation17]  }
 0x287   :  { %v4139_v8 = vpack.c.bf16 %v1481_v51, %v1474_v61  ;;  %2301 = vmatpush.bf16.msrb.mxu2 %v3135_v37  ;;  %2312 = vmatpush.bf16.msrb.mxu3 %v3223_v58  ;;  %v3252_v37 = vld [vmem:[#allocation16 + $0x208] sm:$0xf0]  ;;  %v1605_v45 = vperm.slane %v1603_v42, 0  ;;  %s2377_s26 = sshll.u32 %s3982_s10, 4  ;;  %s2378_s26 = int_to_ptr.vmem [resolvable:$true] %s2377_s26 }
 0x288   :  { %v1417_v9 = vpop.f32.mrf.mxu2  ;;  %v3412_v58 = vld [vmem:[#allocation16 + $0x348] sm:$0xf0]  ;;  %v3255_v61 = vor.u32 %v3652_v54, %v3252_v37 }
 0x289   :  { %v1418_v15 = vadd.f32 %v1417_v9, %v1403_v7  ;;  %2233 = vmatmul.bf16.vlgmr.msra.gmra.mxu1 %v4139_v8  ;;  %v3415_v51 = vor.u32 %v3692_v57, %v3412_v58  ;;  %v1455_v7 = vld [vmem:[#allocation7 + $0x34] sm:$0xf]  ;;  %v3335_v9 = vor.u32 %v3672_v0, %v3332_v3 }
 0x28a   :  { %2326 = vmatpush.bf16.msra.mxu0 %v3287_v5  ;;  %2337 = vmatpush.bf16.msra.mxu1 %v3375_v6  ;;  %v3404_v5 = vld [vmem:[#allocation16 + $0x338] sm:$0xf0]  ;;  %v1451_v6 = vld [vmem:[#allocation7 + $0x18] sm:$0xf]  ;;  %v1469_v19 = vunpack.c.l.bf16 %v1455_v7 }
 0x28b   :  { %v1482_v24 = vmul.f32 %v1468_v4, %v1418_v15  ;;  %2302 = vmatpush.bf16.msrb.mxu2 %v3127_v10  ;;  %2313 = vmatpush.bf16.msrb.mxu3 %v3215_v14  ;;  %v3690_v4 = vld [vmem:[#allocation16 + $0x334] sm:$0xf]  ;;  %v3396_v14 = vld [vmem:[#allocation16 + $0x328] sm:$0xf0]  ;;  %v1462_v15 = vunpack.c.l.bf16 %v1451_v6 }
 0x28c   :  { %v3407_v10 = vor.u32 %v3690_v4, %v3404_v5  ;;  %v3399_v20 = vor.u32 %v3688_v13, %v3396_v14 }
 0x28d   :  { %v4142_v31 = vpack.c.bf16 %v1482_v24, %v1475_v23  ;;  %2275 = vmatmul.bf16.vlgmr.msrb.gmra.mxu0 %v4119_v1  ;;  %v3188_v1 = vld [vmem:[#allocation16 + $0x188] sm:$0xf0]  ;;  %v3668_v23 = vld [vmem:[#allocation16 + $0x284] sm:$0xf] }
 0x28e   :  { %2327 = vmatpush.bf16.msra.mxu0 %v3279_v25  ;;  %2338 = vmatpush.bf16.msra.mxu1 %v3367_v26  ;;  %v3191_v59 = vor.u32 %v3636_v49, %v3188_v1  ;;  %v3316_v24 = vld [vmem:[#allocation16 + $0x288] sm:$0xf0]  ;;  %v3686_v26 = vld [vmem:[#allocation16 + $0x314] sm:$0xf] }
 0x28f   :  { %2247 = vmatmul.bf16.vlgmr.msra.gmra.mxu2 %v4142_v31  ;;  %2314 = vmatpush.bf16.msrb.mxu3 %v3207_v35 }
 0x290   :  { %2351 = vmatpush.bf16.msra.mxu2 %v3439_v27  ;;  %v3388_v27 = vld [vmem:[#allocation16 + $0x318] sm:$0xf0] }
 0x291   :  { %v3391_v30 = vor.u32 %v3686_v26, %v3388_v27 }
 0x292   :  { %2328 = vmatpush.bf16.msra.mxu0 %v3271_v39  ;;  %2339 = vmatpush.bf16.msra.mxu1 %v3359_v40 }
 0x293   :  { %2315 = vmatpush.bf16.msrb.mxu3 %v3199_v48 }
 0x294   :  { %2352 = vmatpush.bf16.msra.mxu2 %v3431_v41 }
 0x296   :  { %2329 = vmatpush.bf16.msra.mxu0 %v3263_v50  ;;  %2340 = vmatpush.bf16.msra.mxu1 %v3351_v52 }
 0x297   :  { %2316 = vmatpush.bf16.msrb.mxu3 %v3191_v59 }
 0x298   :  { %v1443_v60 = vpop.f32.mrf.mxu0  ;;  %2353 = vmatpush.bf16.msra.mxu2 %v3423_v53 }
 0x299   :  { %2289 = vmatmul.bf16.vlgmr.msrb.gmra.mxu1 %v4122_v17  ;;  %v3327_v17 = vor.u32 %v3670_v11, %v3324_v12 }
 0x29a   :  { %v1429_v2 = vpop.f32.mrf.mxu3  ;;  %2330 = vmatpush.bf16.msra.mxu0 %v3255_v61  ;;  %2341 = vmatpush.bf16.msra.mxu1 %v3343_v62 }
 0x29b   :  { %v1444_v16 = vadd.f32 %v1443_v60, %v1429_v2  ;;  %v1606_v2 = vperm.slane %v1603_v42, 1 }
 0x29c   :  { %2354 = vmatpush.bf16.msra.mxu2 %v3415_v51 }
 0x29d   :  { %2331 = vmatmul.bf16.vlgmr.msra.gmra.mxu0 %v4139_v8  ;;  %v1476_v28 = vmul.f32 %v1462_v15, %v1444_v16  ;;  %v3319_v8 = vor.u32 %v3668_v23, %v3316_v24 }
 0x29e   :  { %2342 = vmatpush.bf16.msra.mxu1 %v3335_v9 }
 0x29f   :  { %2303 = vmatmul.bf16.vlgmr.msrb.gmra.mxu2 %v4125_v63 }
 0x2a0   :  { %2355 = vmatpush.bf16.msra.mxu2 %v3407_v10  ;;  %v1445_v21 = vpop.f32.mrf.mxu0 }
 0x2a2   :  { %v1431_v22 = vpop.f32.mrf.mxu3  ;;  %2343 = vmatpush.bf16.msra.mxu1 %v3327_v17 }
 0x2a3   :  { %v1446_v25 = vadd.f32 %v1445_v21, %v1431_v22 }
 0x2a4   :  { %2356 = vmatpush.bf16.msra.mxu2 %v3399_v20 }
 0x2a5   :  { %v1483_v29 = vmul.f32 %v1469_v19, %v1446_v25 }
 0x2a6   :  { %2344 = vmatpush.bf16.msra.mxu1 %v3319_v8 }
 0x2a7   :  { %v1490_v63 = vpack.c.bf16 %v1483_v29, %v1476_v28 }
 0x2a8   :  { %2357 = vmatpush.bf16.msra.mxu2 %v3391_v30 }
 0x2a9   :  { %2261 = vmatmul.bf16.vlgmr.msra.gmra.mxu3 %v1490_v63  ;;  %2345 = vmatmul.bf16.vlgmr.msra.gmra.mxu1 %v4142_v31 }
 0x2ac   :  { %2358 = vmatpush.bf16.msra.mxu2 %v3383_v34 }
 0x2af   :  { %2359 = vmatmul.bf16.vlgmr.msra.gmra.mxu2 %v1490_v63 }
 0x2b9   :  { %2317 = vmatmul.bf16.vlgmr.msrb.gmra.mxu3 %v4128_v18 }
 0x2e6   :  { %v2178_v35 = vpop.f32.mrf.mxu1 }
 0x2e7   :  { %v2179_v47 = vadd.f32 %v2178_v35, %v1605_v45 }
 0x2ee   :  { %v2180_v38 = vpop.f32.mrf.mxu1 }
 0x2ef   :  { %v2181_v50 = vadd.f32 %v2180_v38, %v1605_v45 }
 0x2f0   :  { %v2192_v36 = vpop.f32.mrf.mxu2 }
 0x2f1   :  { %v2193_v48 = vadd.f32 %v2192_v36, %v2179_v47 }
 0x2f8   :  { %v2194_v39 = vpop.f32.mrf.mxu2 }
 0x2f9   :  { %v2195_v54 = vadd.f32 %v2194_v39, %v2181_v50 }
 0x2fa   :  { %v2220_v40 = vpop.f32.mrf.mxu0 }
 0x2fc   :  { %v2206_v44 = vpop.f32.mrf.mxu3 }
 0x2fd   :  { %v2207_v1 = vadd.f32 %v2206_v44, %v2193_v48 }
 0x2ff   :  { %v2221_v52 = vadd.f32 %v2220_v40, %v2207_v1 }
 0x302   :  { %v2222_v46 = vpop.f32.mrf.mxu0 }
 0x304   :  { %v2208_v18 = vpop.f32.mrf.mxu3 }
 0x305   :  { %v2209_v56 = vadd.f32 %v2208_v18, %v2195_v54 }
 0x306   :  { %v2234_v41 = vpop.f32.mrf.mxu1 }
 0x307   :  { %v2235_v37 = vadd.f32 %v2234_v41, %v2221_v52  ;;  %v2223_v61 = vadd.f32 %v2222_v46, %v2209_v56 }
 0x30a   :  { %v2276_v53 = vpop.f32.mrf.mxu0 }
 0x30b   :  { %v2277_v9 = vadd.f32 %v2276_v53, %v1606_v2 }
 0x30e   :  { %v2236_v31 = vpop.f32.mrf.mxu1 }
 0x30f   :  { %v2237_v51 = vadd.f32 %v2236_v31, %v2223_v61 }
 0x312   :  { %v2248_v43 = vpop.f32.mrf.mxu2  ;;  %v2278_v0 = vpop.f32.mrf.mxu0 }
 0x313   :  { %v2249_v57 = vadd.f32 %v2248_v43, %v2235_v37  ;;  %v2279_v19 = vadd.f32 %v2278_v0, %v1606_v2 }
 0x316   :  { %v2290_v55 = vpop.f32.mrf.mxu1 }
 0x317   :  { %v2291_v11 = vadd.f32 %v2290_v55, %v2277_v9 }
 0x31a   :  { %v2250_v49 = vpop.f32.mrf.mxu2  ;;  %v2332_v13 = vpop.f32.mrf.mxu0 }
 0x31b   :  { %v2251_v3 = vadd.f32 %v2250_v49, %v2237_v51 }
 0x31e   :  { %v2292_v4 = vpop.f32.mrf.mxu1 }
 0x31f   :  { %v2293_v21 = vadd.f32 %v2292_v4, %v2279_v19 }
 0x322   :  { %v2304_v58 = vpop.f32.mrf.mxu2  ;;  %v2334_v28 = vpop.f32.mrf.mxu0 }
 0x323   :  { %v2305_v12 = vadd.f32 %v2304_v58, %v2291_v11 }
 0x326   :  { %v2346_v16 = vpop.f32.mrf.mxu1 }
 0x32a   :  { %v2306_v7 = vpop.f32.mrf.mxu2 }
 0x32b   :  { %v2307_v23 = vadd.f32 %v2306_v7, %v2293_v21 }
 0x32c   :  { %v2262_v59 = vpop.f32.mrf.mxu3 }
 0x32d   :  { %v2263_v60 = vadd.f32 %v2262_v59, %v2249_v57 }
 0x32e   :  { %v2348_v8 = vpop.f32.mrf.mxu1 }
 0x32f   :  { %v2365_v62 = vmax.f32 %v2263_v60, 0.0 }
 0x331   :  { %2369 = vst [vmem:[#allocation17] sm:$0xff] %v2365_v62 }
 0x332   :  { %v2360_v20 = vpop.f32.mrf.mxu2 }
 0x334   :  { %v2264_v5 = vpop.f32.mrf.mxu3 }
 0x335   :  { %v2265_v6 = vadd.f32 %v2264_v5, %v2251_v3 }
 0x337   :  { %v2367_v10 = vmax.f32 %v2265_v6, 0.0 }
 0x339   :  { %2371 = vst [vmem:[#allocation17 + $0x10] sm:$0xff] %v2367_v10 }
 0x33a   :  { %v2362_v63 = vpop.f32.mrf.mxu2 }
 0x33c   :  { %v2318_v14 = vpop.f32.mrf.mxu3 }
 0x33d   :  { %v2319_v15 = vadd.f32 %v2318_v14, %v2305_v12 }
 0x33f   :  { %v2333_v17 = vadd.f32 %v2332_v13, %v2319_v15 }
 0x341   :  { %v2347_v22 = vadd.f32 %v2346_v16, %v2333_v17 }
 0x343   :  { %v2361_v24 = vadd.f32 %v2360_v20, %v2347_v22 }
 0x344   :  { %v2320_v25 = vpop.f32.mrf.mxu3 }
 0x345   :  { %v2366_v26 = vmax.f32 %v2361_v24, 0.0  ;;  %v2321_v27 = vadd.f32 %v2320_v25, %v2307_v23 }
 0x347   :  { %2370 = vst [vmem:[#allocation17 + $0x8] sm:$0xff] %v2366_v26  ;;  %v2335_v29 = vadd.f32 %v2334_v28, %v2321_v27 }
 0x349   :  { %v2349_v30 = vadd.f32 %v2348_v8, %v2335_v29 }
 0x34b   :  { %v2363_v32 = vadd.f32 %v2362_v63, %v2349_v30 }
 0x34d   :  { %v2368_v33 = vmax.f32 %v2363_v32, 0.0 }
 0x34f   :  { %2372 = vst [vmem:[#allocation17 + $0x18] sm:$0xff] %v2368_v33 }
 0x350   :  { %2385 = dma.vmem_to_hbm [thread:$0]  %s2378_s26, 512, %s2380_s22, [#allocation4], %s3983_s23, %s3983_s23, %s3984_s8  }
 0x351   :  { %3967 = dma.done.wait [#allocation4], 512  }
 0x352   :  { %3968 = vsyncadd [#allocation4], 4294966784 }
 0x353   :  { %2390 = vsyncpa [#allocation3], 1 }
 0x354   :  { %2391 = vsyncpa [#allocation6], 1 }
 0x355   :  { %2392 = vsyncpa [#allocation9], 1 }
 0x356   :  { %2393 = vsyncpa [#allocation12], 1 }
 0x357   :  { %2394 = vsyncpa [#allocation15], 1 }
 0x358   :  { %2395 = vsyncpa [#allocation4], 1 }

</bundles_post_ra>
